<compile_context>
chip_gen: v6e
topology: v6e:2x2x1
jax: 0.10.0
libtpu: 0.0.40
codegen_flags: <defaults>
</compile_context>

<pallas_src>
import numpy as np
import jax
import jax.numpy as jnp
from jax import lax
from jax.experimental import pallas as pl
from jax.experimental.pallas import tpu as pltpu

_LANE = 128
_HALO = 4          # 4 chained 3x3 convs -> 4-row recompute halo per side


def _round_up(x, m):
    return ((x + m - 1) // m) * m


def _pick_tile(total, target, multiple=8):
    """Largest divisor of `total` that is <= target and a multiple of `multiple`
    (falls back to `total`)."""
    if total <= target:
        return total
    for t in range(min(target, total), 0, -1):
        if total % t == 0 and t % multiple == 0:
            return t
    return total


def _vmem_limit_bytes():
    """Generation-aware scoped-VMEM budget: ~75% of physical VMEM
    (~96 MiB on v5e/v6e, ~48 MiB on v7x), clamped to [32, 112] MiB."""
    cap = 64 * 1024 * 1024
    try:
        cap = int(pltpu.get_tpu_info().vmem_capacity_bytes)
    except Exception:
        pass
    lim = (cap * 3) // 4
    return int(min(max(lim, 32 * 1024 * 1024), 112 * 1024 * 1024))


# ----------------------------------------------------------------------------
# Kernel A: fused  [1x1 conv (no bias) + ReLU] -> bilinear upsample -> + skip
# Grid: (N, Hout // TILE_H).  The projection + W-interpolation is computed once
# per image (i == 0) into a VMEM scratch; each H tile then does one small
# matmul contracting Hin and a lane-dense (TILE_H, Wout, Cp) store.
# ----------------------------------------------------------------------------
def _proj_up_add_kernel(x_ref, wp_ref, c_ref, r_ref, skip_ref, o_ref, u_ref):
    i = pl.program_id(1)

    @pl.when(i == 0)   # once per image (H-tile axis is 'arbitrary' = sequential)
    def _():
        _, Hin, Win, Cp = x_ref.shape
        xb = x_ref[0]                                        # (Hin, Win, Cp)
        # 1x1 conv + ReLU: one (Hin*Win, Cp) @ (Cp, Cp) MXU matmul, f32 result
        p = jnp.dot(xb.reshape(Hin * Win, Cp), wp_ref[...],
                    preferred_element_type=jnp.float32)
        p = jnp.maximum(p, 0.0).reshape(Hin, Win, Cp)        # stays f32
        # W interpolation FIRST: (Wout,Win) x (Hin,Win,Cp) -> (Wout,Hin,Cp);
        # the lane dim (Cp) stays last, so no leading-dim transpose is needed.
        u_ref[...] = lax.dot_general(c_ref[...], p, (((1,), (1,)), ((), ())),
                                     preferred_element_type=jnp.float32)

    # per H tile: (TILE_H,Hin) x (Wout,Hin,Cp) -> (TILE_H,Wout,Cp), lane-dense
    t = lax.dot_general(r_ref[...], u_ref[...], (((1,), (1,)), ((), ())),
                        preferred_element_type=jnp.float32)
    o_ref[0] = (t + skip_ref[0].astype(jnp.float32)).astype(o_ref.dtype)
    # TODO(synk): if profiling shows the tiny-K interpolation matmuls on the
    # critical path, replace the 2x upsample with VPU lerps of shifted rows.


def project_upsample_add(x, skip, w_proj, r_mat, c_mat, *, tile_h, vmem_limit):
    N, Hin, Win, Cp = x.shape
    _, Hout, Wout, _ = skip.shape
    assert Hout % tile_h == 0, (Hout, tile_h)
    return pl.pallas_call(
        _proj_up_add_kernel,
        out_shape=jax.ShapeDtypeStruct((N, Hout, Wout, Cp), x.dtype),
        grid=(N, Hout // tile_h),
        in_specs=[
            pl.BlockSpec((1, Hin, Win, Cp), lambda n, i: (n, 0, 0, 0)),
            pl.BlockSpec((Cp, Cp), lambda n, i: (0, 0)),
            pl.BlockSpec((Wout, Win), lambda n, i: (0, 0)),
            pl.BlockSpec((tile_h, Hin), lambda n, i: (i, 0)),
            pl.BlockSpec((1, tile_h, Wout, Cp), lambda n, i: (n, i, 0, 0)),
        ],
        out_specs=pl.BlockSpec((1, tile_h, Wout, Cp), lambda n, i: (n, i, 0, 0)),
        scratch_shapes=[pltpu.VMEM((Wout, Hin, Cp), jnp.float32)],
        compiler_params=pltpu.CompilerParams(
            dimension_semantics=("parallel", "arbitrary"),
            vmem_limit_bytes=vmem_limit),
    )(x, w_proj, c_mat, r_mat, skip)


# ----------------------------------------------------------------------------
# Kernel B: fused double PreActResidualConvUnit, row-tiled with 4-row halo.
#   y1 = x  + relu(conv3x3(relu(conv3x3(x ))))
#   y2 = y1 + relu(conv3x3(relu(conv3x3(y1))))
# Each 3x3 conv = 9-tap accumulation of (HE*W,Cp)@(Cp,Cp) MXU matmuls (f32 acc).
# Haloed input rows are streamed with a manual double-buffered DMA.
# ----------------------------------------------------------------------------
def _double_prcu_kernel(x_hbm, w1a_ref, w2a_ref, w1b_ref, w2b_ref, o_ref,
                        xbuf, pad_ref, sem):
    cdt = pad_ref.dtype
    _, TILE_H, W, Cp = o_ref.shape
    HE = xbuf.shape[1]                         # TILE_H + 2*_HALO

    n = pl.program_id(0)
    i = pl.program_id(1)
    n_tiles = pl.num_programs(1)
    slot = i % 2

    def start_fetch(tile_idx, slot_idx):
        pltpu.make_async_copy(x_hbm.at[n, pl.ds(tile_idx * TILE_H, HE)],
                              xbuf.at[slot_idx], sem.at[slot_idx]).start()

    @pl.when(i == 0)                           # prime the double buffer
    def _():
        start_fetch(0, 0)

    pltpu.make_async_copy(x_hbm.at[n, pl.ds(i * TILE_H, HE)],
                          xbuf.at[slot], sem.at[slot]).wait()

    @pl.when(i + 1 < n_tiles)                  # prefetch next tile behind compute
    def _():
        start_fetch(i + 1, 1 - slot)

    # Stage the haloed tile.  The input was pre-padded with 1 zero column per
    # side in HBM, so this copy also establishes the zero W border of the
    # scratch.  The scratch's own first/last rows only feed the discarded halo
    # rows, so they are left untouched (no per-step border memset).
    pad_ref[1:HE + 1, :, :] = xbuf[slot]

    top = i == 0
    bot = i == n_tiles - 1

    def stage(val):
        """Write an intermediate into the scratch interior, re-asserting the
        per-layer SAME zero padding at the true image top/bottom rows."""
        pad_ref[1:HE + 1, 1:W + 1, :] = val.astype(cdt)

        @pl.when(top)
        def _():
            pad_ref[1:1 + _HALO, 1:W + 1, :] = jnp.zeros((_HALO, W, Cp), cdt)

        @pl.when(bot)
        def _():
            pad_ref[1 + HE - _HALO:1 + HE, 1:W + 1, :] = jnp.zeros((_HALO, W, Cp), cdt)

    def conv3x3_relu(w_ref):
        # 9-tap accumulation: K = Cp already fills MXU depth; no 9x im2col
        # patches buffer.  Accumulator stays f32 (MRB accumulates on v7x).
        acc = jnp.zeros((HE * W, Cp), jnp.float32)
        for t in range(9):
            ky, kx = t // 3, t % 3
            lhs = pad_ref[ky:ky + HE, kx:kx + W, :].reshape(HE * W, Cp)
            acc = acc + jnp.dot(lhs, w_ref[t], preferred_element_type=jnp.float32)
        return jnp.maximum(acc, 0.0).reshape(HE, W, Cp)

    xe = pad_ref[1:HE + 1, 1:W + 1, :].astype(jnp.float32)   # haloed input tile

    # residual unit 1
    stage(conv3x3_relu(w1a_ref))
    y1 = xe + conv3x3_relu(w2a_ref)

    # residual unit 2
    stage(y1)
    stage(conv3x3_relu(w1b_ref))
    y2 = y1 + conv3x3_relu(w2b_ref)

    # keep only the central TILE_H rows; the 4-row margins are recompute halo
    o_ref[0] = y2[_HALO:_HALO + TILE_H].astype(o_ref.dtype)


def double_residual_conv_unit(x, w1a, w2a, w1b, w2b, *, tile_h, vmem_limit):
    N, H, W, Cp = x.shape
    assert H % tile_h == 0, (H, tile_h)
    n_tiles = H // tile_h
    HE = tile_h + 2 * _HALO
    # Pre-pad in HBM: 4 zero rows per side (recompute halo + image-boundary
    # zeros) and 1 zero column per side (SAME padding in W, carried into the
    # conv scratch by the per-tile DMA).
    xp = jnp.pad(x, ((0, 0), (_HALO, _HALO), (1, 1), (0, 0)))
    wspec = pl.BlockSpec((9, Cp, Cp), lambda n, i: (0, 0, 0))
    # TODO(synk): constant-index weight blocks are still double-buffered by the
    # pipeline; single-buffer them (pl.Buffered(1)) once verified in lowering.
    return pl.pallas_call(
        _double_prcu_kernel,
        out_shape=jax.ShapeDtypeStruct((N, H, W, Cp), x.dtype),
        grid=(N, n_tiles),
        in_specs=[
            pl.BlockSpec(memory_space=pl.ANY),      # haloed rows fetched manually
            wspec, wspec, wspec, wspec,
        ],
        out_specs=pl.BlockSpec((1, tile_h, W, Cp), lambda n, i: (n, i, 0, 0)),
        scratch_shapes=[
            pltpu.VMEM((2, HE, W + 2, Cp), x.dtype),     # DMA double buffer
            pltpu.VMEM((HE + 2, W + 2, Cp), x.dtype),    # conv halo scratch
            pltpu.SemaphoreType.DMA((2,)),
        ],
        compiler_params=pltpu.CompilerParams(
            dimension_semantics=("parallel", "arbitrary"),
            vmem_limit_bytes=vmem_limit),
    )(xp, w1a, w2a, w1b, w2b)


# ----------------------------------------------------------------------------
# Bilinear interpolation matrix matching PyTorch align_corners=False
# ----------------------------------------------------------------------------
def bilinear_matrix(out_size, in_size):
    m = np.zeros((out_size, in_size), np.float32)
    scale = in_size / out_size
    for d in range(out_size):
        src = max((d + 0.5) * scale - 0.5, 0.0)
        x0 = min(int(np.floor(src)), in_size - 1)
        x1 = min(x0 + 1, in_size - 1)
        lam = src - x0
        m[d, x0] += 1.0 - lam
        m[d, x1] += lam
    return jnp.asarray(m)


# ----------------------------------------------------------------------------
# Parameter prep: pad channels to Cp (lane-dense); 3x3 weights kept (9, Cp, Cp)
# ----------------------------------------------------------------------------
def prepare_params(params, Cp, dtype):
    C = params["w_proj"].shape[0]
    dc = Cp - C

    def pad_1x1(w):                       # (C, C) -> (Cp, Cp)
        return jnp.pad(w, ((0, dc), (0, dc))).astype(dtype)

    def pad_3x3(w):                       # (9, C, C) -> (9, Cp, Cp)
        return jnp.pad(w, ((0, 0), (0, dc), (0, dc))).astype(dtype)

    return {
        "w_proj": pad_1x1(params["w_proj"]),
        "w1a": pad_3x3(params["w1a"]), "w2a": pad_3x3(params["w2a"]),
        "w1b": pad_3x3(params["w1b"]), "w2b": pad_3x3(params["w2b"]),
    }


# ----------------------------------------------------------------------------
# FeatureFusionBlock forward (first=False: both residual units present)
# ----------------------------------------------------------------------------
def feature_fusion_block(x, skip, params, *, compute_dtype=jnp.float32,
                         tile_h_up=None, tile_h_res=None):
    """x, skip: (N,H,W,C) float32 NHWC. compute_dtype=bfloat16 halves HBM/VMEM
    bytes and uses the bf16 MXU (recommended on v6e/v7x); accumulation and
    inter-matmul intermediates stay f32."""
    # TODO(synk): first=True / skip=None module variants (single residual unit,
    # no upsample-add) are not wired up here.
    N, Hin, Win, C = x.shape
    _, Hout, Wout, _ = skip.shape
    Cp = _round_up(C, _LANE)              # lane-dense channels (no-op at ch=256)
    dc = Cp - C

    vmem_limit = _vmem_limit_bytes()
    pp = prepare_params(params, Cp, compute_dtype)
    pad_c = lambda a: jnp.pad(a, ((0, 0), (0, 0), (0, 0), (0, dc))).astype(compute_dtype)
    r_mat = bilinear_matrix(Hout, Hin)    # interp matrices stay f32
    c_mat = bilinear_matrix(Wout, Win)

    th_up = tile_h_up if tile_h_up is not None else _pick_tile(Hout, 64)
    th_res = tile_h_res if tile_h_res is not None else _pick_tile(Hout, 32)

    y = project_upsample_add(pad_c(x), pad_c(skip), pp["w_proj"], r_mat, c_mat,
                             tile_h=th_up, vmem_limit=vmem_limit)
    y = double_residual_conv_unit(y, pp["w1a"], pp["w2a"], pp["w1b"], pp["w2b"],
                                  tile_h=th_res, vmem_limit=vmem_limit)
    return y[..., :C].astype(jnp.float32)


# ----------------------------------------------------------------------------
# Pure-JAX f32 reference (same weight layout) for correctness checks
# ----------------------------------------------------------------------------
def _ref_forward(x, skip, params):
    C = x.shape[-1]

    def conv3x3_relu(z, w):
        whwio = w.reshape(3, 3, C, C)
        y = lax.conv_general_dilated(z, whwio, (1, 1), "SAME",
                                     dimension_numbers=("NHWC", "HWIO", "NHWC"))
        return jnp.maximum(y, 0.0)

    def prcu(z, w1, w2):
        return z + conv3x3_relu(conv3x3_relu(z, w1), w2)

    y = jnp.maximum(jnp.einsum("nhwc,cd->nhwd", x, params["w_proj"]), 0.0)
    R = bilinear_matrix(skip.shape[1], y.shape[1])
    Cm = bilinear_matrix(skip.shape[2], y.shape[2])
    t = jnp.einsum("oh,nhwc->nowc", R, y)
    u = jnp.einsum("pw,nowc->nopc", Cm, t)
    y = u + skip
    y = prcu(y, params["w1a"], params["w2a"])
    y = prcu(y, params["w1b"], params["w2b"])
    return y


if __name__ == "__main__":
    # Small shapes: N=2, ch=32, x is 8x8, skip is 16x16 (x gets upsampled 2x).
    N, C = 2, 32
    Hin, Win = 8, 8
    Hs, Ws = 16, 16

    key = jax.random.PRNGKey(0)
    ks = jax.random.split(key, 8)
    x_nhwc = jax.random.normal(ks[0], (N, Hin, Win, C), jnp.float32)
    skip_nhwc = jax.random.normal(ks[1], (N, Hs, Ws, C), jnp.float32)

    scale = 0.1
    params = {
        # 1x1 conv weight in (Cin, Cout) matmul form
        "w_proj": scale * jax.random.normal(ks[2], (C, C), jnp.float32),
        # 3x3 conv weights in (9, Cin, Cout) form, [ky*3+kx, ci, co]
        "w1a": scale * jax.random.normal(ks[3], (9, C, C), jnp.float32),
        "w2a": scale * jax.random.normal(ks[4], (9, C, C), jnp.float32),
        "w1b": scale * jax.random.normal(ks[5], (9, C, C), jnp.float32),
        "w2b": scale * jax.random.normal(ks[6], (9, C, C), jnp.float32),
    }

    ref = jax.block_until_ready(_ref_forward(x_nhwc, skip_nhwc, params))

    # f32 path with explicit small tiles so the multi-tile / halo / prefetch
    # paths of both kernels are exercised (2 H tiles each).
    out = feature_fusion_block(x_nhwc, skip_nhwc, params,
                               compute_dtype=jnp.float32,
                               tile_h_up=8, tile_h_res=8)
    out = jax.block_until_ready(out)
    assert out.shape == (N, Hs, Ws, C)
    np.testing.assert_allclose(np.asarray(out), np.asarray(ref),
                               rtol=1e-4, atol=1e-4)

    # bf16 path with auto tile selection (single-tile path), f32 accumulation.
    out_bf16 = feature_fusion_block(x_nhwc, skip_nhwc, params,
                                    compute_dtype=jnp.bfloat16)
    out_bf16 = jax.block_until_ready(out_bf16)
    np.testing.assert_allclose(np.asarray(out_bf16), np.asarray(ref),
                               rtol=1e-1, atol=1e-1)

    print("KERNEL_OK")
</pallas_src>

<mosaic_0001>
module attributes {stable_mosaic.version = 11 : i64} {
  func.func @_proj_up_add_kernel(%arg0: i32, %arg1: i32, %arg2: memref<1x8x8x128xf32, #tpu.memory_space<vmem>>, %arg3: memref<128x128xf32, #tpu.memory_space<vmem>>, %arg4: memref<16x8xf32, #tpu.memory_space<vmem>>, %arg5: memref<8x8xf32, #tpu.memory_space<vmem>>, %arg6: memref<1x8x16x128xf32, #tpu.memory_space<vmem>>, %arg7: memref<1x8x16x128xf32, #tpu.memory_space<vmem>>, %arg8: memref<16x8x128xf32, #tpu.memory_space<vmem>>) attributes {dimension_semantics = [#tpu.dimension_semantics<parallel>, #tpu.dimension_semantics<arbitrary>], iteration_bounds = array<i64: 2, 2>, scalar_prefetch = 0 : i64, scratch_operands = 1 : i64, tpu.core_type = #tpu.core_type<tc>, window_params = [{transform_indices = @transform_0, window_bounds = array<i64: 1, 8, 8, 128>}, {pipeline_mode = #tpu.pipeline_mode<synchronous>, transform_indices = @transform_1, window_bounds = array<i64: 128, 128>}, {pipeline_mode = #tpu.pipeline_mode<synchronous>, transform_indices = @transform_2, window_bounds = array<i64: 16, 8>}, {transform_indices = @transform_3, window_bounds = array<i64: 8, 8>}, {transform_indices = @transform_4, window_bounds = array<i64: 1, 8, 16, 128>}, {transform_indices = @transform_5, window_bounds = array<i64: 1, 8, 16, 128>}]} {
    %c0_i32 = arith.constant 0 : i32
    %0 = arith.cmpi eq, %arg1, %c0_i32 : i32
    %1 = arith.extui %0 : i1 to i32
    %c0_i32_0 = arith.constant 0 : i32
    %2 = arith.cmpi ne, %1, %c0_i32_0 : i32
    scf.if %2 {
      %c0_13 = arith.constant 0 : index
      %c0_14 = arith.constant 0 : index
      %c0_15 = arith.constant 0 : index
      %c0_16 = arith.constant 0 : index
      %12 = vector.load %arg2[%c0_13, %c0_14, %c0_15, %c0_16] : memref<1x8x8x128xf32, #tpu.memory_space<vmem>>, vector<1x8x8x128xf32>
      %13 = vector.shape_cast %12 : vector<1x8x8x128xf32> to vector<8x8x128xf32>
      %14 = vector.shape_cast %13 : vector<8x8x128xf32> to vector<64x128xf32>
      %c0_17 = arith.constant 0 : index
      %c0_18 = arith.constant 0 : index
      %15 = vector.load %arg3[%c0_17, %c0_18] : memref<128x128xf32, #tpu.memory_space<vmem>>, vector<128x128xf32>
      %cst_19 = arith.constant dense<0.000000e+00> : vector<64x128xf32>
      %16 = tpu.matmul %14, %15, %cst_19 {dimension_numbers = #tpu.dot_dimension_numbers<[1], [0], [0], [1], [0, 0, 1, 1], [], []>} : vector<64x128xf32>, vector<128x128xf32>, vector<64x128xf32> -> vector<64x128xf32>
      %cst_20 = arith.constant 0.000000e+00 : f32
      %17 = vector.broadcast %cst_20 : f32 to vector<64x128xf32>
      %18 = arith.maximumf %16, %17 : vector<64x128xf32>
      %19 = vector.shape_cast %18 : vector<64x128xf32> to vector<8x8x128xf32>
      %c0_21 = arith.constant 0 : index
      %c0_22 = arith.constant 0 : index
      %20 = vector.load %arg4[%c0_21, %c0_22] : memref<16x8xf32, #tpu.memory_space<vmem>>, vector<16x8xf32>
      %cst_23 = arith.constant dense<0.000000e+00> : vector<16x8x128xf32>
      %21 = tpu.matmul %20, %19, %cst_23 {dimension_numbers = #tpu.dot_dimension_numbers<[1], [1], [0], [0, 2], [0, 0, 1, 0, 1, 2], [], []>} : vector<16x8xf32>, vector<8x8x128xf32>, vector<16x8x128xf32> -> vector<16x8x128xf32>
      %c0_24 = arith.constant 0 : index
      %c0_25 = arith.constant 0 : index
      %c0_26 = arith.constant 0 : index
      %22 = vector.load %arg8[%c0_24, %c0_25, %c0_26] : memref<16x8x128xf32, #tpu.memory_space<vmem>>, vector<16x8x128xf32>
      tpu.vector_store %arg8[%c0_24, %c0_25, %c0_26], %21 {strides = array<i32>} : memref<16x8x128xf32, #tpu.memory_space<vmem>>, vector<16x8x128xf32>,
    } else {
    }
    %c0 = arith.constant 0 : index
    %c0_1 = arith.constant 0 : index
    %3 = vector.load %arg5[%c0, %c0_1] : memref<8x8xf32, #tpu.memory_space<vmem>>, vector<8x8xf32>
    %c0_2 = arith.constant 0 : index
    %c0_3 = arith.constant 0 : index
    %c0_4 = arith.constant 0 : index
    %4 = vector.load %arg8[%c0_2, %c0_3, %c0_4] : memref<16x8x128xf32, #tpu.memory_space<vmem>>, vector<16x8x128xf32>
    %cst = arith.constant dense<0.000000e+00> : vector<8x16x128xf32>
    %5 = tpu.matmul %3, %4, %cst {dimension_numbers = #tpu.dot_dimension_numbers<[1], [1], [0], [0, 2], [0, 0, 1, 0, 1, 2], [], []>} : vector<8x8xf32>, vector<16x8x128xf32>, vector<8x16x128xf32> -> vector<8x16x128xf32>
    %c0_5 = arith.constant 0 : index
    %c0_6 = arith.constant 0 : index
    %c0_7 = arith.constant 0 : index
    %c0_8 = arith.constant 0 : index
    %6 = vector.load %arg6[%c0_5, %c0_6, %c0_7, %c0_8] : memref<1x8x16x128xf32, #tpu.memory_space<vmem>>, vector<1x8x16x128xf32>
    %7 = vector.shape_cast %6 : vector<1x8x16x128xf32> to vector<8x16x128xf32>
    %8 = arith.addf %5, %7 : vector<8x16x128xf32>
    %c0_9 = arith.constant 0 : index
    %c0_10 = arith.constant 0 : index
    %c0_11 = arith.constant 0 : index
    %c0_12 = arith.constant 0 : index
    %9 = vector.load %arg7[%c0_9, %c0_10, %c0_11, %c0_12] : memref<1x8x16x128xf32, #tpu.memory_space<vmem>>, vector<1x8x16x128xf32>
    %10 = vector.shape_cast %9 : vector<1x8x16x128xf32> to vector<8x16x128xf32>
    %11 = vector.shape_cast %8 : vector<8x16x128xf32> to vector<1x8x16x128xf32>
    tpu.vector_store %arg7[%c0_9, %c0_10, %c0_11, %c0_12], %11 {strides = array<i32>} : memref<1x8x16x128xf32, #tpu.memory_space<vmem>>, vector<1x8x16x128xf32>,
    return
  }
  func.func @transform_0(%arg0: i32, %arg1: i32) -> (i32, i32, i32, i32) {
    %c0_i32 = arith.constant 0 : i32
    %c0_i32_0 = arith.constant 0 : i32
    %c0_i32_1 = arith.constant 0 : i32
    %c0_i32_2 = arith.constant 0 : i32
    return %arg0, %c0_i32, %c0_i32_0, %c0_i32_1 : i32, i32, i32, i32
  }
  func.func @transform_1(%arg0: i32, %arg1: i32) -> (i32, i32) {
    %c0_i32 = arith.constant 0 : i32
    %c0_i32_0 = arith.constant 0 : i32
    %c0_i32_1 = arith.constant 0 : i32
    return %c0_i32, %c0_i32_0 : i32, i32
  }
  func.func @transform_2(%arg0: i32, %arg1: i32) -> (i32, i32) {
    %c0_i32 = arith.constant 0 : i32
    %c0_i32_0 = arith.constant 0 : i32
    %c0_i32_1 = arith.constant 0 : i32
    return %c0_i32, %c0_i32_0 : i32, i32
  }
  func.func @transform_3(%arg0: i32, %arg1: i32) -> (i32, i32) {
    %c0_i32 = arith.constant 0 : i32
    %c0_i32_0 = arith.constant 0 : i32
    return %arg1, %c0_i32 : i32, i32
  }
  func.func @transform_4(%arg0: i32, %arg1: i32) -> (i32, i32, i32, i32) {
    %c0_i32 = arith.constant 0 : i32
    %c0_i32_0 = arith.constant 0 : i32
    %c0_i32_1 = arith.constant 0 : i32
    return %arg0, %arg1, %c0_i32, %c0_i32_0 : i32, i32, i32, i32
  }
  func.func @transform_5(%arg0: i32, %arg1: i32) -> (i32, i32, i32, i32) {
    %c0_i32 = arith.constant 0 : i32
    %c0_i32_0 = arith.constant 0 : i32
    %c0_i32_1 = arith.constant 0 : i32
    return %arg0, %arg1, %c0_i32, %c0_i32_0 : i32, i32, i32, i32
  }
}

</mosaic_0001>

<bundles_post_ra>
// kernel: tpu_custom_call.1
= control target key start
LH: loop header
LB: loop body
LE: loop exit
PB: predicated region body
PF: predicated region fallthrough
CT: control target
= control target key end

     0   :  { %s4452_s0 = inlined_call_operand.hbm [shape: f32[2,8,8,128], index: 0, kind: input, shape index: {}]   ;;  %s4453_s1 = inlined_call_operand.hbm [shape: f32[128,128], index: 1, kind: input, shape index: {}]   ;;  %s4454_s2 = inlined_call_operand.vmem [shape: f32[16,8], index: 2, kind: input, shape index: {}]   ;;  %s4455_s3 = inlined_call_operand.vmem [shape: f32[16,8], index: 3, kind: input, shape index: {}]   ;;  %s4456_s4 = inlined_call_operand.hbm [shape: f32[2,16,16,128], index: 4, kind: input, shape index: {}]   ;;  %s4457_s5 = inlined_call_operand.hbm [shape: f32[2,16,16,128], index: 5, kind: output, shape index: {}]  }
   0x1   :  { %4475 = sst [smem:[#allocation22_spill]] %s4452_s0 }
   0x2   :  { %4476 = sst [smem:[#allocation23_spill]] %s4453_s1 }
   0x3   :  { %4477 = sst [smem:[#allocation24_spill]] %s4454_s2 }
   0x4   :  { %4478 = sst [smem:[#allocation25_spill]] %s4455_s3 }
   0x5   :  { %4479 = sst [smem:[#allocation26_spill]] %s4457_s5 }
   0x6   :  { %10 = vsyncpa [#allocation4], 0 }
   0x7   :  { %12 = vsyncpa [#allocation4 + $0x1], 0 }
   0x8   :  { %13 = vsyncpa [#allocation7], 0 }
   0x9   :  { %14 = vsyncpa [#allocation5], 0 }
   0xa   :  { %16 = vsyncpa [#allocation5 + $0x1], 0  ;;  %s3808_s18 = smov 0   ;;  %s3810_s19 = smov 0  }
   0xb   :  { %s3812_s20 = smov 0   ;;  %s3814_s21 = smov 0  }
   0xc   :  { %s3816_s22 = smov 0   ;;  %s3818_s23 = smov 0  }
   0xd   :  { %s3820_s24 = smov 0   ;;  %s3822_s25 = smov 0  }
   0xe   :  { %s3824_s26 = smov 0   ;;  %s3826_s27 = smov 0  }
   0xf   :  { %s3828_s28 = smov 0  }
  0x10 LB: > { %4480 = sst [smem:[#allocation14_spill]] %s3722_s18  ;;  %p48_p0 = scmp.ne.s32.totalorder %s3742_s23, %s3738_s22  ;;  %s3762_s28 = sphi %s3828_s28, %s22_s28   ;;  %s3758_s27 = sphi %s3826_s27, %s4532_s27   ;;  %s3754_s26 = sphi %s3824_s26, %s4524_s26   ;;  %s3750_s25 = sphi %s3822_s25, %s4531_s25   ;;  %s3746_s24 = sphi %s3820_s24, %s4523_s24   ;;  %s3742_s23 = sphi %s3818_s23, %s4530_s23   ;;  %s3738_s22 = sphi %s3816_s22, %s4529_s22   ;;  %s3734_s21 = sphi %s3814_s21, %s4528_s21   ;;  %s3730_s20 = sphi %s3812_s20, %s4527_s20   ;;  %s3726_s19 = sphi %s3810_s19, %s4526_s19   ;;  %s3722_s18 = sphi %s3808_s18, %s4525_s18  }
  0x11   : > { %4481 = sst [smem:[#allocation15_spill]] %s3746_s24  ;;  %p4459_p1 = scmp.eq.s32.totalorder %s3762_s28, 0 }
  0x12   : > { %4482 = sst [smem:[#allocation16_spill]] %s3750_s25  ;;  %p4458_p3 = scmp.lt.s32.totalorder %s3762_s28, 4 }
  0x13   : > { %4483 = sst [smem:[#allocation17_spill]] %s3754_s26  ;;  %p50_p2 = por %p4459_p1, %p48_p0 }
  0x14   : > { %s218_s6 = sand.u32 1, %s3762_s28   ;;  %s220_s7 = sand.u32 1, %s3742_s23  }
  0x15   : > { %s3270_s8 = sshll.u32 %s220_s7, 6  ;;  %s3332_s9 = sshll.u32 %s3758_s27, 10 }
  0x16   : > { %s4484_s0 = sld [smem:[#allocation22_spill]]  ;;  %s222_s13 = scalar_lea.vmem [#allocation3], %s3270_s8 }
  0x17   : > { %s229_s14 = sshll.u32 %s222_s13, 4  ;;  %p3879_p4 = pnand %p4458_p3, %p50_p2  ;;  %s230_s14 = int_to_ptr.vmem [resolvable:$true] %s229_s14 }
  0x18   : > { %s3883_s16 = scalar_lea.sflag [#allocation4], %s218_s6  ;;  %s3565_s17 = scalar_lea.vmem %s230_s14, 1024 }
  0x19   : > { %p3554_p5 = pneg %p3879_p4  ;;  %p3566_p6 = scmp.ne.s32.totalorder %s230_s14, %s3565_s17 }
  0x1a   : > { %s3764_s7 = smov [#allocation3]  }
  0x1b   : > { %p3568_p7 = pnand %p3566_p6, %p3554_p5  ;;  %s3570_s10 = sshll.u32 %s3764_s7, 4  ;;  %s3571_s10 = int_to_ptr.vmem [resolvable:$false] %s3570_s10 }
  0x1c   : > { %s228_s12 = scalar_lea.hbm %s4484_s0, %s3332_s9  ;;  %s3572_s8 = scalar_lea.vmem %s3571_s10, 2048 }
  0x1d   : > { %p3569_p8 = pneg %p3568_p7  ;;  %p3573_p9 = scmp.lt.s32.totalorder %s230_s14, %s3571_s10 }
  0x1e   : > { %p3574_p10 = scmp.lt.s32.totalorder %s3572_s8, %s3565_s17 }
  0x20   : > { %p3575_p11 = por %p3574_p10, %p3573_p9 }
  0x22   : > { %p3576_p12 = pnand %p3575_p11, %p3569_p8 }
  0x24   : > { %3579 = shalt.err (!%p3576_p12)
}
  0x25   : > { %s4461_s9 = smov 128   ;;  %s4462_s6 = smov 8  }
  0x26   : > { %3420 = dma.hbm_to_vmem [thread:$0]  (!%p3879_p4), %s228_s12, 1024, %s230_s14, %s3883_s16, %s4461_s9, %s4461_s9, %s4462_s6  }
  0x27   : > { %s3894_s11 = sadd.s32 4294967295, %s3762_s28   ;;  %s3266_s13 = sadd.s32 4294967294, %s3762_s28  }
  0x28   : > { %p54_p13 = scmp.ne.s32.totalorder %s3738_s22, %s3734_s21  ;;  %p4460_p0 = scmp.eq.s32.totalorder %s3894_s11, 0 }
  0x29   : > { %p150_p2 = scmp.ne.s32.totalorder %s3726_s19, %s3722_s18  ;;  %p182_p4 = scmp.eq.s32.totalorder %s3266_s13, 3 }
  0x2a   : > { %p3905_p6 = por %p4460_p0, %p54_p13  ;;  %p3267_p8 = scmp.ge.s32.totalorder %s3762_s28, 1 }
  0x2b   : > { %p3911_p7 = por %p150_p2, %p4460_p0  ;;  %p3916_p9 = por %p182_p4, %p150_p2 }
  0x2c   : > { %p189_p10 = scmp.lt.s32.totalorder %s3762_s28, 5  ;;  %s3767_s17 = smov [#allocation6]  }
  0x2d   : > { %s4487_s12 = scalar_select %p3911_p7, 1, 0 }
  0x2e   : > { %s4489_s21 = scalar_select %p3916_p9, 1, 0 }
  0x2f   : > { %4488 = sst [smem:[#allocation18_spill]] %s4487_s12  ;;  %p3921_p11 = pnand %p3267_p8, %p189_p10 }
  0x30   : > { %4490 = sst [smem:[#allocation19_spill]] %s4489_s21  ;;  %s201_s7 = sshll.u32 %s3767_s17, 4  ;;  %s202_s7 = int_to_ptr.vmem [resolvable:$true] %s201_s7 }
  0x31   : > { %p3413_p12 = pneg %p3921_p11  ;;  %s31_s8 = sadd.s32 1, %s3754_s26 }
  0x32   : > { %p3934_p2 = scmp.ge.s32.totalorder %s31_s8, 2  ;;  %p144_p4 = scmp.ne.s32.totalorder %s3730_s20, %s3726_s19 }
  0x33   : > { %p3929_p13 = pnand %p3413_p12, %p4460_p0  ;;  %s3591_s29 = scalar_lea.vmem %s202_s7, 2048 }
  0x34   : > { %p3592_p10 = scmp.ne.s32.totalorder %s202_s7, %s3591_s29  ;;  %p3599_p1 = scmp.lt.s32.totalorder %s202_s7, %s202_s7 }
  0x35   : > { %p3582_p8 = pneg %p3929_p13  ;;  %p3600_p9 = scmp.lt.s32.totalorder %s3591_s29, %s3591_s29 }
  0x37   : > { %p3594_p3 = pnand %p3592_p10, %p3582_p8  ;;  %p3601_p12 = por %p3600_p9, %p3599_p1 }
  0x39   : > { %p3595_p5 = pneg %p3594_p3 }
  0x3b   : > { %p3602_p0 = pnand %p3601_p12, %p3595_p5 }
  0x3d   : > { %3605 = shalt.err (!%p3602_p0)
}
  0x3e   : > { %s4494_s1 = sld [smem:[#allocation23_spill]]  ;;  %s4534_s8 = smov (%p3934_p2, %s31_s8), 0 }
  0x3f   : > { %4495 = sst [smem:[#allocation20_spill]] %s4534_s8  ;;  %s4496_s0 = sadd.s32 1, %s3758_s27 }
  0x40   : > { %s4536_s0 = smov (!%p3934_p2, %s4496_s0), %s3758_s27  ;;  %s133_s29 = ssub.s32 %s3754_s26, %s4534_s8 }
  0x41   : > { %p4497_p1 = scmp.eq.s32.totalorder %s3762_s28, 0  ;;  %p36_p0 = scmp.ge.s32.totalorder %s4536_s0, 2 }
  0x42   : > { %p4499_p5 = scmp.eq.s32.totalorder %s3894_s11, 3  ;;  %s248_s13 = sand.u32 1, %s3730_s20  }
  0x43   : > { %p3967_p3 = por %p144_p4, %p4497_p1  ;;  %s3333_s17 = sshll.u32 %s3754_s26, 4 }
  0x44   : > { %3416 = dma.hbm_to_vmem [thread:$0]  (!%p3929_p13), %s4494_s1, 2048, %s202_s7, [#allocation7], %s4461_s9, %s4461_s9, %s4462_s6  }
  0x45   : > { %p3976_p9 = por %p4499_p5, %p144_p4  ;;  %s4538_s0 = smov (%p36_p0, %s4536_s0), 0 }
  0x46   : > { %s3273_s9 = sshll.u32 %s248_s13, 7  ;;  %s3276_s6 = sshll.u32 %s3758_s27, 5 }
  0x47   : > { %s4500_s7 = scalar_select %p3976_p9, 1, 0 }
  0x48   : > { %s38_s30 = ssub.s32 %s3758_s27, %s4538_s0  ;;  %s257_s8 = sadd.s32 %s3333_s17, %s3276_s6 }
  0x49   : > { %4501 = sst [smem:[#allocation21_spill]] %s4500_s7  ;;  %p39_p13 = scmp.eq.s32.totalorder %s38_s30, 0 }
  0x4a   : > { %s134_s1 = sor.u32 %s133_s29, %s38_s30  ;;  %s4502_s21 = sadd.s32 1, %s3742_s23 }
  0x4b   : > { %p135_p2 = scmp.eq.s32.totalorder %s134_s1, 0  ;;  %s4503_s5 = sadd.s32 1, %s3730_s20 }
  0x4c   : > { %s3990_s18 = scalar_select %p39_p13, %s3742_s23, %s4502_s21  }
  0x4d   : > { %s3995_s25 = scalar_select %p135_p2, %s3730_s20, %s4503_s5  }
  0x4e   : > { %s3277_s7 = sshll.u32 %s257_s8, 7  ;;  %s250_s26 = scalar_lea.vmem [#allocation8], %s3273_s9 }
  0x4f   : > { %s260_s2 = sshll.u32 %s250_s26, 4  ;;  %s259_s12 = scalar_lea.hbm %s4456_s4, %s3277_s7  ;;  %s261_s2 = int_to_ptr.vmem [resolvable:$true] %s260_s2 }
  0x50   : > { %p4504_p4 = scmp.lt.s32.totalorder %s3762_s28, 4  ;;  %s3619_s1 = scalar_lea.vmem %s261_s2, 2048 }
  0x51   : > { %p3620_p12 = scmp.ne.s32.totalorder %s261_s2, %s3619_s1  ;;  %s3768_s5 = smov [#allocation8]  }
  0x52   : > { %p4004_p8 = pnand %p4504_p4, %p3967_p3  ;;  %s3624_s26 = sshll.u32 %s3768_s5, 4  ;;  %s3625_s26 = int_to_ptr.vmem [resolvable:$false] %s3624_s26 }
  0x53   : > { %s3626_s9 = scalar_lea.vmem %s3625_s26, 4096  ;;  %p3627_p5 = scmp.lt.s32.totalorder %s261_s2, %s3625_s26 }
  0x54   : > { %p3608_p10 = pneg %p4004_p8  ;;  %p3628_p13 = scmp.lt.s32.totalorder %s3626_s9, %s3619_s1 }
  0x56   : > { %p3622_p1 = pnand %p3620_p12, %p3608_p10  ;;  %p3629_p2 = por %p3628_p13, %p3627_p5 }
  0x58   : > { %p3623_p0 = pneg %p3622_p1 }
  0x5a   : > { %p3630_p9 = pnand %p3629_p2, %p3623_p0 }
  0x5c   : > { %3633 = shalt.err (!%p3630_p9)
}
  0x5d   : > { %s4506_s3 = smov 8   ;;  %s4507_s24 = smov 128  }
  0x5e   : > { %3423 = dma.hbm_to_vmem [thread:$0]  (!%p4004_p8), %s259_s12, 2048, %s261_s2, %s3883_s16, %s4507_s24, %s4507_s24, %s4506_s3  }
  0x5f   : > { %272 = sbr.rel (%p3921_p11) target bundleno = 891 (0x37b), region = 40  ;;  %s274_s6 = sand.u32 (!%p3921_p11), 1, %s3894_s11  }
  0x60   : > { %s276_s21 = sand.u32 (!%p3921_p11), 1, %s3738_s22   ;;  %s275_s29 = scalar_lea.sflag (!%p3921_p11), [#allocation4], %s274_s6 }
  0x61   : > { %s3279_s8 = sshll.u32 (!%p3921_p11), %s276_s21, 6 }
  0x62   : > { %s4020_s10 = scalar_lea.vmem (!%p3921_p11), [#allocation3], %s3279_s8 }
  0x64   : > { %3705 = dma.done.wait (%p3905_p6), %s275_s29, 1024  }
  0x65   : > { %3707 = vsyncadd (%p3905_p6), %s275_s29, 4294966272  ;;  %p4508_p3 = scmp.eq.s32.totalorder %s3894_s11, 0 }
  0x67   : > { %3709 = dma.done.wait (%p4508_p3), [#allocation7], 2048   ;;  %p4509_p9 = pmov %p4508_p3 }
  0x68   : > { %s289_s16 = sand.u32 1, %s3726_s19  }
  0x69   : > { %3711 = vsyncadd (%p4509_p9), [#allocation7], 4294965248  ;;  %s3281_s12 = sshll.u32 %s289_s16, 7 }
  0x6a   : > { %s4033_s14 = scalar_lea.vmem [#allocation8], %s3281_s12 }
  0x6b   : > { %3713 = dma.done.wait (%p3911_p7), %s275_s29, 2048  }
  0x6c   : > { %3715 = vsyncadd (%p3911_p7), %s275_s29, 4294965248  ;;  %s4511_s15 = sld [smem:[#allocation15_spill]]  ;;  %s4046_s5 = scalar_lea.vmem [#allocation9], %s3281_s12 }
  0x6d   : > { %s4512_s30 = sld [smem:[#allocation25_spill]] }
  0x72   : > { %p327_p6 = scmp.lt.s32.totalorder %s4511_s15, 1  ;;  %p3284_p11 = scmp.ne.s32.totalorder %s4511_s15, 0 }
  0x73   : > { %s4513_s3 = sld [smem:[#allocation24_spill]] (!%p3284_p11) }
  0x74   : > { %s328_s7 = scalar_select %p327_p6, %s4511_s15, 1 }
  0x75   : > { %336 = sbr.rel (%p3284_p11) target bundleno = 617 (0x269), region = 56 }
  0x76   : > { %s3283_s13 = sshll.u32 %s328_s7, 3 }
  0x77   : > { %s4044_s1 = scalar_lea.vmem %s4512_s30, %s3283_s13 }
  0x7a   : > { %v360_v0 = vld [vmem:[#allocation6 + $0x78] sm:$0xff]  ;;  %v359_v1 = vld [vmem:[#allocation6 + $0x70] sm:$0xff]  ;;  %v358_v2 = vld [vmem:[#allocation6 + $0x68] sm:$0xff]  ;;  %v3769_v24 = vmov 0.0   ;;  %v3770_v25 = vmov 1983009808   ;;  %v481_v27 = vlaneseq }
  0x7b   : > { %3359 = vmatprep.subr.mxu0 %v360_v0  ;;  %v357_v3 = vld [vmem:[#allocation6 + $0x60] sm:$0xff]  ;;  %v356_v5 = vld [vmem:[#allocation6 + $0x58] sm:$0xff]  ;;  %v355_v6 = vld [vmem:[#allocation6 + $0x50] sm:$0xff]  ;;  %875 = vmatprep.mubr.f32.mxu1 %v3769_v24  ;;  %v479_v26 = vunpack.c.l.s4 %v3770_v25  ;;  %v3771_v32 = vmov 1934713408   ;;  %vm804_vm0 = vcmask 64512  }
  0x7c   : > { %3360 = vmatpush3.msra.mxu0 %v360_v0  ;;  %v337_v4 = vld [vmem:[%s4020_s10] sm:$0xff]  ;;  %v354_v7 = vld [vmem:[#allocation6 + $0x48] sm:$0xff]  ;;  %v352_v9 = vld [vmem:[#allocation6 + $0x38] sm:$0xff]  ;;  %v482_v31 = vshrl.u32 %v481_v27, 7  ;;  %v543_v33 = vunpack.c.l.s4 %v3771_v32 }
  0x7d   : > { %3361 = vmatprep.subr.mxu0 %v359_v1  ;;  %3391 = vmatprep.mubr.f32.mxu0 %v337_v4  ;;  %v353_v8 = vld [vmem:[#allocation6 + $0x40] sm:$0xff]  ;;  %v351_v10 = vld [vmem:[#allocation6 + $0x30] sm:$0xff]  ;;  %v350_v11 = vld [vmem:[#allocation6 + $0x28] sm:$0xff]  ;;  %v480_v30 = vunpack.c.0.s8 %v479_v26 }
  0x7e   : > { %3362 = vmatpush3.msra.mxu0 %v359_v1  ;;  %v349_v12 = vld [vmem:[#allocation6 + $0x20] sm:$0xff]  ;;  %v348_v13 = vld [vmem:[#allocation6 + $0x18] sm:$0xff]  ;;  %v347_v14 = vld [vmem:[#allocation6 + $0x10] sm:$0xff]  ;;  %v544_v39 = vunpack.c.0.s8 %v543_v33 }
  0x7f   : > { %3363 = vmatprep.subr.mxu0 %v358_v2  ;;  %v346_v15 = vld [vmem:[#allocation6 + $0x8] sm:$0xff]  ;;  %v345_v16 = vld [vmem:[#allocation6] sm:$0xff]  ;;  %v339_v18 = vld [vmem:[%s4020_s10 + $0x10] sm:$0xff]  ;;  %v4058_v37 = vsub.s32 %v480_v30, %v482_v31 }
  0x80   : > { %3364 = vmatpush3.msra.mxu0 %v358_v2  ;;  %v338_v17 = vld [vmem:[%s4020_s10 + $0x8] sm:$0xff]  ;;  %v340_v19 = vld [vmem:[%s4020_s10 + $0x18] sm:$0xff]  ;;  %v341_v20 = vld [vmem:[%s4020_s10 + $0x20] sm:$0xff]  ;;  %v4060_v47 = vsub.s32 %v544_v39, %v482_v31 }
  0x81   : > { %3365 = vmatprep.subr.mxu0 %v357_v3  ;;  %v342_v21 = vld [vmem:[%s4020_s10 + $0x28] sm:$0xff]  ;;  %v343_v22 = vld [vmem:[%s4020_s10 + $0x30] sm:$0xff]  ;;  %v344_v23 = vld [vmem:[%s4020_s10 + $0x38] sm:$0xff] }
  0x82   : > { %3366 = vmatpush3.msra.mxu0 %v357_v3 }
  0x83   : > { %3367 = vmatprep.subr.mxu0 %v356_v5 }
  0x84   : > { %3368 = vmatpush3.msra.mxu0 %v356_v5 }
  0x85   : > { %3369 = vmatprep.subr.mxu0 %v355_v6 }
  0x86   : > { %3370 = vmatpush3.msra.mxu0 %v355_v6 }
  0x87   : > { %3371 = vmatprep.subr.mxu0 %v354_v7 }
  0x88   : > { %3372 = vmatpush3.msra.mxu0 %v354_v7 }
  0x89   : > { %3373 = vmatprep.subr.mxu0 %v353_v8 }
  0x8a   : > { %3374 = vmatpush3.msra.mxu0 %v353_v8 }
  0x8b   : > { %3375 = vmatprep.subr.mxu0 %v352_v9 }
  0x8c   : > { %3376 = vmatpush3.msra.mxu0 %v352_v9 }
  0x8d   : > { %3377 = vmatprep.subr.mxu0 %v351_v10 }
  0x8e   : > { %3378 = vmatpush3.msra.mxu0 %v351_v10 }
  0x8f   : > { %3379 = vmatprep.subr.mxu0 %v350_v11 }
  0x90   : > { %3380 = vmatpush3.msra.mxu0 %v350_v11 }
  0x91   : > { %3381 = vmatprep.subr.mxu0 %v349_v12 }
  0x92   : > { %3382 = vmatpush3.msra.mxu0 %v349_v12 }
  0x93   : > { %3383 = vmatprep.subr.mxu0 %v348_v13 }
  0x94   : > { %3384 = vmatpush3.msra.mxu0 %v348_v13 }
  0x95   : > { %3385 = vmatprep.subr.mxu0 %v347_v14 }
  0x96   : > { %3386 = vmatpush3.msra.mxu0 %v347_v14 }
  0x97   : > { %3387 = vmatprep.subr.mxu0 %v346_v15 }
  0x98   : > { %3388 = vmatpush3.msra.mxu0 %v346_v15 }
  0x99   : > { %3389 = vmatprep.subr.mxu0 %v345_v16 }
  0x9a   : > { %3390 = vmatpush3.msra.mxu0 %v345_v16 }
  0x9b   : > { %3392 = vmatmul.mubr.f32.vlgmr.msra.gmra.mxu0 %v338_v17 }
  0x9c   : > { %3394 = vmatprep.mubr.f32.mxu0 %v339_v18 }
  0x9f   : > { %3395 = vmatmul.mubr.f32.gmra.mxu0 %v340_v19 }
  0xa0   : > { %3397 = vmatprep.mubr.f32.mxu0 %v341_v20 }
  0xa3   : > { %3398 = vmatmul.mubr.f32.gmra.mxu0 %v342_v21 }
  0xa4   : > { %3400 = vmatprep.mubr.f32.mxu0 %v343_v22 }
  0xa7   : > { %3401 = vmatmul.mubr.f32.gmra.mxu0 %v344_v23 }
 0x15b   : > { %v3393_v28 = vpop.f32.mrf.mxu0 }
 0x15c   : > { %v467_v35 = vmax.f32 %v3393_v28, 0.0 }
 0x15d   : > { %v427_v29 = vpop.f32.mrf.mxu0 }
 0x15e   : > { %v466_v40 = vmax.f32 %v427_v29, 0.0 }
 0x15f   : > { %v3396_v34 = vpop.f32.mrf.mxu0 }
 0x160   : > { %v469_v36 = vmax.f32 %v3396_v34, 0.0 }
 0x161   : > { %v437_v38 = vpop.f32.mrf.mxu0 }
 0x162   : > { %v492_v41 = vcombine.low %v467_v35, %v469_v36  ;;  %v493_v42 = vcombine.high %v467_v35, %v469_v36  ;;  %v468_v43 = vmax.f32 %v437_v38, 0.0 }
 0x163   : > { %v3399_v44 = vpop.f32.mrf.mxu0 }
 0x164   : > { %v476_v45 = vcombine.low %v466_v40, %v468_v43  ;;  %v477_v46 = vcombine.high %v466_v40, %v468_v43  ;;  %v500_v49 = vrot.slane %v492_v41, %v4058_v37  ;;  %v507_v50 = vrot.slane %v493_v42, %v4058_v37  ;;  %v474_v43 = vld [vmem:[%s4513_s3] sm:$0xff] }
 0x165   : > { %v447_v48 = vpop.f32.mrf.mxu0  ;;  %v471_v53 = vmax.f32 %v3399_v44, 0.0 }
 0x166   : > { %v484_v51 = vrot.slane %v476_v45, %v4058_v37  ;;  %v491_v52 = vrot.slane %v477_v46, %v4058_v37  ;;  %v470_v59 = vmax.f32 %v447_v48, 0.0 }
 0x167   : > { %v3402_v54 = vpop.f32.mrf.mxu0 }
 0x168   : > { %v540_v55 = vcombine.low %v484_v51, %v500_v49  ;;  %v541_v56 = vcombine.high %v484_v51, %v500_v49  ;;  %v556_v57 = vcombine.low %v491_v52, %v507_v50  ;;  %v557_v58 = vcombine.high %v491_v52, %v507_v50  ;;  %v475_v51 = vld [vmem:[%s4513_s3 + $0x8] sm:$0xff] }
 0x169   : > { %v473_v60 = vmax.f32 %v3402_v54, 0.0  ;;  %v457_v61 = vpop.f32.mrf.mxu0 }
 0x16a   : > { %v548_v62 = vrot.slane %v540_v55, %v4060_v47  ;;  %v555_v63 = vrot.slane %v541_v56, %v4060_v47  ;;  %v564_v0 = vrot.slane %v556_v57, %v4060_v47  ;;  %v571_v1 = vrot.slane %v557_v58, %v4060_v47 }
 0x16b   : > { %v524_v2 = vcombine.low %v471_v53, %v473_v60  ;;  %v525_v3 = vcombine.high %v471_v53, %v473_v60  ;;  %v472_v4 = vmax.f32 %v457_v61, 0.0 }
 0x16c   : > { %v3285_v5 = vcombine.low %v548_v62, %v555_v63  ;;  %v3287_v6 = vcombine.high %v548_v62, %v555_v63  ;;  %v3289_v7 = vcombine.low %v564_v0, %v571_v1  ;;  %v3291_v8 = vcombine.high %v564_v0, %v571_v1 }
 0x16d   : > { %v532_v9 = vrot.slane %v524_v2, %v4058_v37  ;;  %v539_v10 = vrot.slane %v525_v3, %v4058_v37  ;;  %v508_v11 = vcombine.low %v470_v59, %v472_v4  ;;  %v509_v12 = vcombine.high %v470_v59, %v472_v4 }
 0x16e   : > { %v620_v13 = vrot.slane %v3285_v5, %v4058_v37  ;;  %v636_v14 = vrot.slane %v3287_v6, %v4058_v37  ;;  %v652_v15 = vrot.slane %v3289_v7, %v4058_v37  ;;  %v668_v16 = vrot.slane %v3291_v8, %v4058_v37 }
 0x16f   : > { %v516_v17 = vrot.slane %v508_v11, %v4058_v37  ;;  %v523_v18 = vrot.slane %v509_v12, %v4058_v37  ;;  %v748_v0 = vcombine.low %v3769_v24, %v3769_v24  ;;  %v749_v7 = vcombine.high %v3769_v24, %v3769_v24 }
 0x170   : > { %v676_v19 = vcombine.low %v620_v13, %v636_v14  ;;  %v708_v20 = vcombine.low %v652_v15, %v668_v16  ;;  %v677_v21 = vcombine.high %v620_v13, %v636_v14  ;;  %v709_v22 = vcombine.high %v652_v15, %v668_v16 }
 0x171   : > { %v572_v23 = vcombine.low %v516_v17, %v532_v9  ;;  %v573_v25 = vcombine.high %v516_v17, %v532_v9  ;;  %v588_v26 = vcombine.low %v523_v18, %v539_v10  ;;  %v589_v27 = vcombine.high %v523_v18, %v539_v10 }
 0x172   : > { %v684_v28 = vrot.slane %v676_v19, %v4060_v47  ;;  %v716_v29 = vrot.slane %v708_v20, %v4060_v47  ;;  %v691_v30 = vrot.slane %v677_v21, %v4060_v47  ;;  %v723_v31 = vrot.slane %v709_v22, %v4060_v47 }
 0x173   : > { %v580_v32 = vrot.slane %v572_v23, %v4060_v47  ;;  %v587_v33 = vrot.slane %v573_v25, %v4060_v47  ;;  %v596_v34 = vrot.slane %v588_v26, %v4060_v47  ;;  %v603_v35 = vrot.slane %v589_v27, %v4060_v47 }
 0x174   : > { %v741_v36 = vcombine.high %v684_v28, %v716_v29  ;;  %v740_v38 = vcombine.low %v684_v28, %v716_v29  ;;  %v743_v44 = vcombine.high %v691_v30, %v723_v31  ;;  %v742_v45 = vcombine.low %v691_v30, %v723_v31 }
 0x175   : > { %v3286_v39 = vcombine.low %v580_v32, %v587_v33  ;;  %v3288_v40 = vcombine.high %v580_v32, %v587_v33  ;;  %v3290_v41 = vcombine.low %v596_v34, %v603_v35  ;;  %v3292_v42 = vcombine.high %v596_v34, %v603_v35 }
 0x176   : > { %841 = vmatprep.subr.mxu1 %v741_v36  ;;  %v756_v1 = vrot.slane %v748_v0, %v4058_v37  ;;  %v763_v13 = vrot.slane %v749_v7, %v4058_v37 }
 0x177   : > { %842 = vmatpush1.msra.mxu1 %v740_v38  ;;  %v627_v46 = vrot.slane %v3286_v39, %v4058_v37  ;;  %v643_v48 = vrot.slane %v3288_v40, %v4058_v37  ;;  %v659_v49 = vrot.slane %v3290_v41, %v4058_v37  ;;  %v675_v50 = vrot.slane %v3292_v42, %v4058_v37 }
 0x178   : > { %3293 = vmatmul.mubr.msk.f32.vlgmr.msra.gmra.mxu1 %vm804_vm0, %v474_v43  ;;  %918 = vmatprep.subr.mxu1 %v743_v44  ;;  %v765_v4 = vcombine.high %v756_v1, %v756_v1  ;;  %v764_v5 = vcombine.low %v756_v1, %v756_v1  ;;  %v780_v20 = vcombine.low %v763_v13, %v763_v13 }
 0x179   : > { %919 = vmatpush1.msra.mxu1 %v742_v45  ;;  %881 = vmatprep.mubr.f32.mxu1 %v3769_v24  ;;  %v692_v52 = vcombine.low %v627_v46, %v643_v48  ;;  %v724_v53 = vcombine.low %v659_v49, %v675_v50  ;;  %v693_v54 = vcombine.high %v627_v46, %v643_v48 }
 0x17a   : > { %v725_v55 = vcombine.high %v659_v49, %v675_v50  ;;  %v779_v9 = vrot.slane %v765_v4, %v4060_v47  ;;  %v772_v10 = vrot.slane %v764_v5, %v4060_v47  ;;  %v781_v21 = vcombine.high %v763_v13, %v763_v13 }
 0x17b   : > { %v700_v56 = vrot.slane %v692_v52, %v4060_v47  ;;  %v732_v57 = vrot.slane %v724_v53, %v4060_v47  ;;  %v707_v58 = vrot.slane %v693_v54, %v4060_v47  ;;  %v788_v29 = vrot.slane %v780_v20, %v4060_v47 }
 0x17c   : > { %3294 = vmatmul.mubr.msk.f32.gmra.mxu1 %vm804_vm0, %v475_v51  ;;  %v739_v59 = vrot.slane %v725_v55, %v4060_v47  ;;  %v799_v12 = vcombine.high %v779_v9, %v779_v9  ;;  %v797_v14 = vcombine.high %v772_v10, %v772_v10  ;;  %v798_v15 = vcombine.low %v779_v9, %v779_v9 }
 0x17d   : > { %v745_v60 = vcombine.high %v700_v56, %v732_v57  ;;  %952 = vmatprep.mubr.f32.mxu1 %v3769_v24  ;;  %v744_v61 = vcombine.low %v700_v56, %v732_v57  ;;  %v796_v17 = vcombine.low %v772_v10, %v772_v10  ;;  %v795_v30 = vrot.slane %v781_v21, %v4060_v47 }
 0x17e   : > { %v747_v62 = vcombine.high %v707_v58, %v739_v59  ;;  %v746_v63 = vcombine.low %v707_v58, %v739_v59  ;;  %v800_v42 = vcombine.low %v788_v29, %v788_v29  ;;  %v801_v50 = vcombine.high %v788_v29, %v788_v29 }
 0x17f   : > { %995 = vmatprep.subr.mxu1 %v745_v60 }
 0x180   : > { %3295 = vmatmul.mubr.msk.f32.vlgmr.msra.gmra.mxu1 %vm804_vm0, %v474_v43 }
 0x181   : > { %996 = vmatpush1.msra.mxu1 %v744_v61  ;;  %958 = vmatprep.mubr.f32.mxu1 %v3769_v24 }
 0x182   : > { %1072 = vmatprep.subr.mxu1 %v747_v62 }
 0x184   : > { %3296 = vmatmul.mubr.msk.f32.gmra.mxu1 %vm804_vm0, %v475_v51 }
 0x185   : > { %1029 = vmatprep.mubr.f32.mxu1 %v3769_v24 }
 0x188   : > { %3297 = vmatmul.mubr.msk.f32.vlgmr.msra.gmra.mxu1 %vm804_vm0, %v474_v43 }
 0x189   : > { %1073 = vmatpush1.msra.mxu1 %v746_v63  ;;  %1035 = vmatprep.mubr.f32.mxu1 %v3769_v24 }
 0x18c   : > { %3298 = vmatmul.mubr.msk.f32.gmra.mxu1 %vm804_vm0, %v475_v51 }
 0x18d   : > { %1106 = vmatprep.mubr.f32.mxu1 %v3769_v24 }
 0x190   : > { %3299 = vmatmul.mubr.msk.f32.vlgmr.msra.gmra.mxu1 %vm804_vm0, %v474_v43  ;;  %v802_v43 = vcombine.low %v795_v30, %v795_v30 }
 0x191   : > { %1112 = vmatprep.mubr.f32.mxu1 %v3769_v24 }
 0x194   : > { %3300 = vmatmul.mubr.msk.f32.gmra.mxu1 %vm804_vm0, %v475_v51  ;;  %v803_v51 = vcombine.high %v795_v30, %v795_v30 }
 0x238   : > { %v877_v2 = vpop.f32.mrf.mxu1 }
 0x239   : > { %v878_v25 = vadd.f32 %v877_v2, %v796_v17 }
 0x23a   : > { %v879_v3 = vpop.f32.mrf.mxu1 }
 0x23b   : > { %v880_v22 = vadd.f32 %v879_v3, %v797_v14 }
 0x23c   : > { %v883_v6 = vpop.f32.mrf.mxu1 }
 0x23d   : > { %v884_v36 = vadd.f32 %v883_v6, %v796_v17 }
 0x23e   : > { %v885_v8 = vpop.f32.mrf.mxu1 }
 0x23f   : > { %v886_v38 = vadd.f32 %v885_v8, %v797_v14 }
 0x240   : > { %v954_v11 = vpop.f32.mrf.mxu1 }
 0x241   : > { %v955_v23 = vadd.f32 %v954_v11, %v798_v15 }
 0x242   : > { %v956_v16 = vpop.f32.mrf.mxu1 }
 0x243   : > { %v957_v18 = vadd.f32 %v956_v16, %v799_v12  ;;  %v1119_v31 = vcombine.low %v878_v25, %v955_v23  ;;  %v1120_v32 = vcombine.high %v878_v25, %v955_v23 }
 0x244   : > { %v960_v19 = vpop.f32.mrf.mxu1 }
 0x245   : > { %v1135_v26 = vcombine.low %v880_v22, %v957_v18  ;;  %v1136_v27 = vcombine.high %v880_v22, %v957_v18  ;;  %v961_v33 = vadd.f32 %v960_v19, %v798_v15  ;;  %v1127_v44 = vrot.slane %v1119_v31, %v4058_v37 }
 0x246   : > { %v962_v24 = vpop.f32.mrf.mxu1  ;;  %v1134_v45 = vrot.slane %v1120_v32, %v4058_v37 }
 0x247   : > { %v963_v34 = vadd.f32 %v962_v24, %v799_v12  ;;  %v1143_v39 = vrot.slane %v1135_v26, %v4058_v37  ;;  %v1150_v40 = vrot.slane %v1136_v27, %v4058_v37  ;;  %v1255_v46 = vcombine.low %v884_v36, %v961_v33 }
 0x248   : > { %v1031_v28 = vpop.f32.mrf.mxu1  ;;  %v1256_v55 = vcombine.high %v884_v36, %v961_v33 }
 0x249   : > { %v1271_v48 = vcombine.low %v886_v38, %v963_v34  ;;  %v1183_v52 = vcombine.low %v1127_v44, %v1143_v39  ;;  %v1184_v53 = vcombine.high %v1127_v44, %v1143_v39  ;;  %v1199_v54 = vcombine.low %v1134_v45, %v1150_v40 }
 0x24a   : > { %v1033_v35 = vpop.f32.mrf.mxu1  ;;  %v1200_v57 = vcombine.high %v1134_v45, %v1150_v40  ;;  %v1272_v58 = vcombine.high %v886_v38, %v963_v34  ;;  %v1032_v59 = vadd.f32 %v1031_v28, %v800_v42  ;;  %v4130_v61 = vrot.slane %v1255_v46, %v4058_v37 }
 0x24b   : > { %v1279_v62 = vrot.slane %v1271_v48, %v4058_v37  ;;  %v1034_v0 = vadd.f32 %v1033_v35, %v801_v50  ;;  %v1191_v4 = vrot.slane %v1183_v52, %v4060_v47  ;;  %v1198_v5 = vrot.slane %v1184_v53, %v4060_v47 }
 0x24c   : > { %v1037_v41 = vpop.f32.mrf.mxu1  ;;  %v1207_v6 = vrot.slane %v1199_v54, %v4060_v47  ;;  %v4137_v7 = vrot.slane %v1256_v55, %v4058_v37  ;;  %v1214_v9 = vrot.slane %v1200_v57, %v4060_v47  ;;  %v1286_v10 = vrot.slane %v1272_v58, %v4058_v37 }
 0x24d   : > { %v1319_v13 = vcombine.low %v4130_v61, %v1279_v62  ;;  %v1038_v14 = vadd.f32 %v1037_v41, %v800_v42  ;;  %v1320_v22 = vcombine.high %v4130_v61, %v1279_v62 }
 0x24e   : > { %v1039_v49 = vpop.f32.mrf.mxu1  ;;  %v1335_v30 = vcombine.low %v4137_v7, %v1286_v10  ;;  %v1336_v31 = vcombine.high %v4137_v7, %v1286_v10 }
 0x24f   : > { %v1040_v23 = vadd.f32 %v1039_v49, %v801_v50 }
 0x250   : > { %v1108_v56 = vpop.f32.mrf.mxu1  ;;  %v1343_v61 = vrot.slane %v1335_v30, %v4060_v47  ;;  %v1350_v62 = vrot.slane %v1336_v31, %v4060_v47 }
 0x251   : > { %v1109_v60 = vadd.f32 %v1108_v56, %v802_v43  ;;  %v1327_v56 = vrot.slane %v1319_v13, %v4060_v47 }
 0x252   : > { %v1110_v63 = vpop.f32.mrf.mxu1 }
 0x253   : > { %v1151_v1 = vcombine.low %v1032_v59, %v1109_v60  ;;  %v1152_v2 = vcombine.high %v1032_v59, %v1109_v60  ;;  %v1111_v3 = vadd.f32 %v1110_v63, %v803_v51 }
 0x254   : > { %v1114_v8 = vpop.f32.mrf.mxu1 }
 0x255   : > { %v1167_v11 = vcombine.low %v1034_v0, %v1111_v3  ;;  %v1168_v12 = vcombine.high %v1034_v0, %v1111_v3  ;;  %v1159_v15 = vrot.slane %v1151_v1, %v4058_v37  ;;  %v1115_v16 = vadd.f32 %v1114_v8, %v802_v43 }
 0x256   : > { %v1116_v17 = vpop.f32.mrf.mxu1  ;;  %v1166_v18 = vrot.slane %v1152_v2, %v4058_v37 }
 0x257   : > { %v1175_v19 = vrot.slane %v1167_v11, %v4058_v37  ;;  %v1182_v20 = vrot.slane %v1168_v12, %v4058_v37  ;;  %v1117_v21 = vadd.f32 %v1116_v17, %v803_v51  ;;  %v1287_v24 = vcombine.low %v1038_v14, %v1115_v16 }
 0x258   : > { %v1288_v25 = vcombine.high %v1038_v14, %v1115_v16 }
 0x259   : > { %v1215_v26 = vcombine.low %v1159_v15, %v1175_v19  ;;  %v1216_v27 = vcombine.high %v1159_v15, %v1175_v19  ;;  %v1231_v28 = vcombine.low %v1166_v18, %v1182_v20  ;;  %v1232_v29 = vcombine.high %v1166_v18, %v1182_v20 }
 0x25a   : > { %v1303_v32 = vcombine.low %v1040_v23, %v1117_v21  ;;  %v1304_v33 = vcombine.high %v1040_v23, %v1117_v21  ;;  %v1295_v39 = vrot.slane %v1287_v24, %v4058_v37  ;;  %v1302_v40 = vrot.slane %v1288_v25, %v4058_v37 }
 0x25b   : > { %v1223_v34 = vrot.slane %v1215_v26, %v4060_v47  ;;  %v1230_v35 = vrot.slane %v1216_v27, %v4060_v47  ;;  %v1239_v36 = vrot.slane %v1231_v28, %v4060_v47  ;;  %v1246_v38 = vrot.slane %v1232_v29, %v4060_v47 }
 0x25c   : > { %v1311_v41 = vrot.slane %v1303_v32, %v4058_v37  ;;  %v1318_v42 = vrot.slane %v1304_v33, %v4058_v37  ;;  %v1334_v37 = vrot.slane %v1320_v22, %v4060_v47 }
 0x25d   : > { %v1247_v43 = vcombine.low %v1191_v4, %v1223_v34  ;;  %v1248_v44 = vcombine.high %v1191_v4, %v1223_v34  ;;  %v1249_v45 = vcombine.low %v1198_v5, %v1230_v35  ;;  %v1250_v46 = vcombine.high %v1198_v5, %v1230_v35 }
 0x25e   : > { %v1251_v48 = vcombine.low %v1207_v6, %v1239_v36  ;;  %v1252_v49 = vcombine.high %v1207_v6, %v1239_v36  ;;  %v1253_v50 = vcombine.low %v1214_v9, %v1246_v38  ;;  %v1254_v51 = vcombine.high %v1214_v9, %v1246_v38 }
 0x25f   : > { %1391 = vst [vmem:[#allocation2 + $0x30] sm:$0xff] %v1247_v43  ;;  %1392 = vst [vmem:[#allocation2] sm:$0xff] %v1248_v44  ;;  %v1351_v52 = vcombine.low %v1295_v39, %v1311_v41  ;;  %v1352_v53 = vcombine.high %v1295_v39, %v1311_v41  ;;  %v1367_v54 = vcombine.low %v1302_v40, %v1318_v42 }
 0x260   : > { %1393 = vst [vmem:[#allocation2 + $0x58] sm:$0xff] %v1249_v45  ;;  %1394 = vst [vmem:[#allocation2 + $0x18] sm:$0xff] %v1250_v46  ;;  %v1368_v55 = vcombine.high %v1302_v40, %v1318_v42 }
 0x261   : > { %1395 = vst [vmem:[#allocation2 + $0x50] sm:$0xff] %v1251_v48  ;;  %1396 = vst [vmem:[#allocation2 + $0x68] sm:$0xff] %v1252_v49  ;;  %v1359_v57 = vrot.slane %v1351_v52, %v4060_v47  ;;  %v1366_v58 = vrot.slane %v1352_v53, %v4060_v47  ;;  %v1375_v59 = vrot.slane %v1367_v54, %v4060_v47 }
 0x262   : > { %1397 = vst [vmem:[#allocation2 + $0x8] sm:$0xff] %v1253_v50  ;;  %1398 = vst [vmem:[#allocation2 + $0x48] sm:$0xff] %v1254_v51  ;;  %v1382_v60 = vrot.slane %v1368_v55, %v4060_v47 }
 0x263   : > { %v1383_v63 = vcombine.low %v1327_v56, %v1359_v57  ;;  %v1384_v0 = vcombine.high %v1327_v56, %v1359_v57  ;;  %v1385_v1 = vcombine.low %v1334_v37, %v1366_v58  ;;  %v1386_v2 = vcombine.high %v1334_v37, %v1366_v58 }
 0x264   : > { %v1387_v3 = vcombine.low %v1343_v61, %v1375_v59  ;;  %v1388_v4 = vcombine.high %v1343_v61, %v1375_v59  ;;  %v1389_v5 = vcombine.low %v1350_v62, %v1382_v60  ;;  %v1390_v6 = vcombine.high %v1350_v62, %v1382_v60 }
 0x265   : > { %1399 = vst [vmem:[#allocation2 + $0x40] sm:$0xff] %v1383_v63  ;;  %1400 = vst [vmem:[#allocation2 + $0x20] sm:$0xff] %v1384_v0 }
 0x266   : > { %1401 = vst [vmem:[#allocation2 + $0x10] sm:$0xff] %v1385_v1  ;;  %1402 = vst [vmem:[#allocation2 + $0x38] sm:$0xff] %v1386_v2 }
 0x267   : > { %1403 = vst [vmem:[#allocation2 + $0x60] sm:$0xff] %v1387_v3  ;;  %1404 = vst [vmem:[#allocation2 + $0x70] sm:$0xff] %v1388_v4 }
 0x268   : > { %1405 = vst [vmem:[#allocation2 + $0x78] sm:$0xff] %v1389_v5  ;;  %1406 = vst [vmem:[#allocation2 + $0x28] sm:$0xff] %v1390_v6 }
 0x269 PF: > { %v1445_v7 = vlaneseq  ;;  %v3531_v8 = vld [vmem:[#allocation2 + $0x30] ss:$40 sps:$4 sm:$0xff]   ;;  %v3533_v47 = vld [vmem:[#allocation2 + $0x34] ss:$40 sps:$4 sm:$0xff]   ;;  %v3772_v9 = vmov 1983009808  }
 0x26a   : > { %v1443_v10 = vunpack.c.l.s4 %v3772_v9  ;;  %v3773_v11 = vmov 0.0   ;;  %v3534_v13 = vld [vmem:[#allocation2] ss:$24 sps:$4 sm:$0xff]   ;;  %v3536_v14 = vld [vmem:[#allocation2 + $0x4] ss:$24 sps:$4 sm:$0xff]   ;;  %v1413_v16 = vld [vmem:[#allocation2 + $0x68] sm:$0xff] }
 0x26b   : > { %2324 = vmatprep.mubr.f32.mxu0 %v3773_v11  ;;  %2395 = vmatprep.mubr.f32.mxu1 %v3773_v11  ;;  %v1446_v12 = vshrl.u32 %v1445_v7, 7  ;;  %v3774_v17 = vmov 1934713408   ;;  %v1415_v19 = vld [vmem:[#allocation2 + $0x48] sm:$0xff]  ;;  %vm2256_vm1 = vcmask 64512   ;;  %s4514_s21 = sld [smem:[#allocation15_spill]] }
 0x26c   : > { %v1444_v15 = vunpack.c.0.s8 %v1443_v10  ;;  %v1507_v18 = vunpack.c.l.s4 %v3774_v17  ;;  %v3537_v20 = vld [vmem:[#allocation2 + $0x50] ss:$-72 sps:$4 sm:$0xff]   ;;  %v3539_v21 = vld [vmem:[#allocation2 + $0x54] ss:$-72 sps:$4 sm:$0xff]   ;;  %v1488_v23 = vcombine.low %v1413_v16, %v1415_v19  ;;  %v1489_v25 = vcombine.high %v1413_v16, %v1415_v19  ;;  %s4515_s8 = sld [smem:[#allocation16_spill]]  ;;  %s4392_s30 = scalar_lea.sflag [#allocation5], %s289_s16 }
 0x26d   : > { %v3540_v26 = vld [vmem:[#allocation2 + $0x40] ss:$-48 sps:$4 sm:$0xff]   ;;  %s4516_s13 = sld [smem:[#allocation26_spill]]  ;;  %s3775_s26 = smov [#allocation9]  }
 0x26e   : > { %v4167_v22 = vsub.s32 %v1444_v15, %v1446_v12  ;;  %v1508_v24 = vunpack.c.0.s8 %v1507_v18  ;;  %v3545_v18 = vld [vmem:[#allocation2 + $0x24] ss:$24 sps:$4 sm:$0xff]   ;;  %s4517_s17 = sld [smem:[#allocation21_spill]]  ;;  %s3638_s9 = sshll.u32 %s3775_s26, 4  ;;  %s3639_s9 = int_to_ptr.vmem [resolvable:$false] %s3638_s9 }
 0x26f   : > { %v3546_v19 = vld [vmem:[#allocation2 + $0x60] ss:$24 sps:$4 sm:$0xff]   ;;  %s3640_s24 = scalar_lea.vmem %s3639_s9, 4096 }
 0x270   : > { %v1448_v27 = vrot.slane %v3531_v8, %v4167_v22  ;;  %v1455_v28 = vrot.slane %v3533_v47, %v4167_v22  ;;  %v1464_v29 = vrot.slane %v3534_v13, %v4167_v22  ;;  %v1471_v30 = vrot.slane %v3536_v14, %v4167_v22  ;;  %v3543_v13 = vld [vmem:[#allocation2 + $0x20] ss:$24 sps:$4 sm:$0xff]  }
 0x271   : > { %v4173_v31 = vsub.s32 %v1508_v24, %v1446_v12  ;;  %v1480_v32 = vrot.slane %v3537_v20, %v4167_v22  ;;  %v1487_v33 = vrot.slane %v3539_v21, %v4167_v22  ;;  %v1496_v34 = vrot.slane %v1488_v23, %v4167_v22  ;;  %v3542_v12 = vld [vmem:[#allocation2 + $0x44] ss:$-48 sps:$4 sm:$0xff]   ;;  %s3334_s29 = sshll.u32 %s4514_s21, 4 }
 0x272   : > { %v1504_v35 = vcombine.low %v1448_v27, %v1464_v29  ;;  %v1505_v36 = vcombine.high %v1448_v27, %v1464_v29  ;;  %v1520_v38 = vcombine.low %v1455_v28, %v1471_v30  ;;  %v1521_v39 = vcombine.high %v1455_v28, %v1471_v30  ;;  %v3548_v20 = vld [vmem:[#allocation2 + $0x64] ss:$24 sps:$4 sm:$0xff]   ;;  %s3328_s10 = sshll.u32 %s4515_s8, 5 }
 0x273   : > { %v1503_v40 = vrot.slane %v1489_v25, %v4167_v22  ;;  %v1536_v41 = vcombine.low %v1480_v32, %v1496_v34  ;;  %v1537_v42 = vcombine.high %v1480_v32, %v1496_v34  ;;  %v4180_v43 = vrot.slane %v3540_v26, %v4167_v22  ;;  %v4205_v30 = vld [vmem:[%s4044_s1] sm:$0xff]  ;;  %s3130_s2 = sadd.s32 %s3334_s29, %s3328_s10 }
 0x274   : > { %v1512_v44 = vrot.slane %v1504_v35, %v4173_v31  ;;  %v1519_v45 = vrot.slane %v1505_v36, %v4173_v31  ;;  %v1528_v46 = vrot.slane %v1520_v38, %v4173_v31  ;;  %v1535_v48 = vrot.slane %v1521_v39, %v4173_v31  ;;  %v3549_v36 = vld [vmem:[#allocation2 + $0x70] ss:$-72 sps:$4 sm:$0xff]   ;;  %s3329_s12 = sshll.u32 %s3130_s2, 7  ;;  %p4518_p4 = scmp.ne.s32.totalorder %s4517_s17, 0 }
 0x275   : > { %v1544_v49 = vrot.slane %v1536_v41, %v4173_v31  ;;  %v1551_v50 = vrot.slane %v1537_v42, %v4173_v31  ;;  %v1552_v51 = vcombine.low %v1487_v33, %v1503_v40  ;;  %v1553_v52 = vcombine.high %v1487_v33, %v1503_v40  ;;  %v3551_v41 = vld [vmem:[#allocation2 + $0x74] ss:$-72 sps:$4 sm:$0xff]   ;;  %s4378_s11 = scalar_lea.hbm %s4516_s13, %s3329_s12 }
 0x276   : > { %v3301_v53 = vcombine.low %v1512_v44, %v1519_v45  ;;  %v3303_v54 = vcombine.high %v1512_v44, %v1519_v45  ;;  %v3305_v55 = vcombine.low %v1528_v46, %v1535_v48  ;;  %v3307_v56 = vcombine.high %v1528_v46, %v1535_v48 }
 0x277   : > { %v1560_v37 = vrot.slane %v1552_v51, %v4173_v31  ;;  %v1567_v57 = vrot.slane %v1553_v52, %v4173_v31  ;;  %v3302_v58 = vcombine.low %v1544_v49, %v1551_v50  ;;  %v3304_v59 = vcombine.high %v1544_v49, %v1551_v50 }
 0x278   : > { %v1720_v60 = vrot.slane %v3301_v53, %v4167_v22  ;;  %v1736_v61 = vrot.slane %v3303_v54, %v4167_v22  ;;  %v1752_v62 = vrot.slane %v3305_v55, %v4167_v22  ;;  %v1768_v63 = vrot.slane %v3307_v56, %v4167_v22 }
 0x279   : > { %v1727_v0 = vrot.slane %v3302_v58, %v4167_v22  ;;  %v1743_v1 = vrot.slane %v3304_v59, %v4167_v22  ;;  %v3306_v2 = vcombine.low %v1560_v37, %v1567_v57  ;;  %v3308_v3 = vcombine.high %v1560_v37, %v1567_v57 }
 0x27a   : > { %v1776_v4 = vcombine.low %v1720_v60, %v1736_v61  ;;  %v1808_v5 = vcombine.low %v1752_v62, %v1768_v63  ;;  %v1777_v6 = vcombine.high %v1720_v60, %v1736_v61  ;;  %v1809_v7 = vcombine.high %v1752_v62, %v1768_v63 }
 0x27b   : > { %v1759_v8 = vrot.slane %v3306_v2, %v4167_v22  ;;  %v1775_v47 = vrot.slane %v3308_v3, %v4167_v22  ;;  %v1792_v9 = vcombine.low %v1727_v0, %v1743_v1  ;;  %v1793_v10 = vcombine.high %v1727_v0, %v1743_v1 }
 0x27c   : > { %v1784_v14 = vrot.slane %v1776_v4, %v4173_v31  ;;  %v1816_v15 = vrot.slane %v1808_v5, %v4173_v31  ;;  %v1791_v16 = vrot.slane %v1777_v6, %v4173_v31  ;;  %v1823_v17 = vrot.slane %v1809_v7, %v4173_v31 }
 0x27d   : > { %v1800_v21 = vrot.slane %v1792_v9, %v4173_v31  ;;  %v1824_v23 = vcombine.low %v1759_v8, %v1775_v47  ;;  %v1807_v24 = vrot.slane %v1793_v10, %v4173_v31  ;;  %v1825_v25 = vcombine.high %v1759_v8, %v1775_v47 }
 0x27e   : > { %v1841_v26 = vcombine.high %v1784_v14, %v1816_v15  ;;  %v1843_v27 = vcombine.high %v1791_v16, %v1823_v17  ;;  %v1840_v28 = vcombine.low %v1784_v14, %v1816_v15  ;;  %v1842_v29 = vcombine.low %v1791_v16, %v1823_v17 }
 0x27f   : > { %v1832_v32 = vrot.slane %v1824_v23, %v4173_v31  ;;  %v1839_v33 = vrot.slane %v1825_v25, %v4173_v31  ;;  %v1591_v34 = vrot.slane %v3542_v12, %v4167_v22  ;;  %v1600_v35 = vrot.slane %v3543_v13, %v4167_v22 }
 0x280   : > { %2290 = vmatprep.subr.mxu0 %v1841_v26  ;;  %2361 = vmatprep.subr.mxu1 %v1843_v27  ;;  %v1607_v38 = vrot.slane %v3545_v18, %v4167_v22  ;;  %v1616_v39 = vrot.slane %v3546_v19, %v4167_v22  ;;  %v1623_v40 = vrot.slane %v3548_v20, %v4167_v22 }
 0x281   : > { %2291 = vmatpush1.msra.mxu0 %v1840_v28  ;;  %2362 = vmatpush1.msra.mxu1 %v1842_v29  ;;  %v1845_v42 = vcombine.high %v1800_v21, %v1832_v32  ;;  %v1847_v44 = vcombine.high %v1807_v24, %v1839_v33  ;;  %v1844_v45 = vcombine.low %v1800_v21, %v1832_v32 }
 0x282   : > { %3317 = vmatmul.mubr.msk.f32.vlgmr.msra.gmra.mxu0 %vm2256_vm1, %v4205_v30  ;;  %3318 = vmatmul.mubr.msk.f32.vlgmr.msra.gmra.mxu1 %vm2256_vm1, %v4205_v30  ;;  %v1846_v46 = vcombine.low %v1807_v24, %v1839_v33  ;;  %v1640_v48 = vcombine.low %v4180_v43, %v1600_v35  ;;  %v1641_v49 = vcombine.high %v4180_v43, %v1600_v35 }
 0x283   : > { %2432 = vmatprep.subr.mxu0 %v1845_v42  ;;  %2503 = vmatprep.subr.mxu1 %v1847_v44  ;;  %v1656_v50 = vcombine.low %v1591_v34, %v1607_v38  ;;  %v1657_v51 = vcombine.high %v1591_v34, %v1607_v38  ;;  %v1632_v52 = vrot.slane %v3549_v36, %v4167_v22 }
 0x284   : > { %2433 = vmatpush1.msra.mxu0 %v1844_v45  ;;  %2504 = vmatpush1.msra.mxu1 %v1846_v46  ;;  %v1648_v53 = vrot.slane %v1640_v48, %v4173_v31  ;;  %v1655_v54 = vrot.slane %v1641_v49, %v4173_v31  ;;  %v1639_v55 = vrot.slane %v3551_v41, %v4167_v22  ;;  %v1426_v45 = vld [vmem:[%s4033_s14 + $0x10] sm:$0xff]  ;;  %v1428_v46 = vld [vmem:[%s4033_s14 + $0x20] sm:$0xff] }
 0x285   : > { %2466 = vmatprep.mubr.f32.mxu0 %v3773_v11  ;;  %2537 = vmatprep.mubr.f32.mxu1 %v3773_v11  ;;  %v1664_v43 = vrot.slane %v1656_v50, %v4173_v31  ;;  %v1671_v56 = vrot.slane %v1657_v51, %v4173_v31  ;;  %v1672_v37 = vcombine.low %v1616_v39, %v1632_v52  ;;  %v1430_v48 = vld [vmem:[%s4033_s14 + $0x30] sm:$0xff]  ;;  %v1432_v49 = vld [vmem:[%s4033_s14 + $0x40] sm:$0xff] }
 0x286   : > { %3319 = vmatmul.mubr.msk.f32.vlgmr.msra.gmra.mxu0 %vm2256_vm1, %v4205_v30  ;;  %3320 = vmatmul.mubr.msk.f32.vlgmr.msra.gmra.mxu1 %vm2256_vm1, %v4205_v30  ;;  %v3309_v57 = vcombine.low %v1648_v53, %v1655_v54  ;;  %v3311_v58 = vcombine.high %v1648_v53, %v1655_v54  ;;  %v1673_v59 = vcombine.high %v1616_v39, %v1632_v52  ;;  %v1434_v50 = vld [vmem:[%s4033_s14 + $0x50] sm:$0xff]  ;;  %v1436_v51 = vld [vmem:[%s4033_s14 + $0x60] sm:$0xff] }
 0x287   : > { %v3313_v60 = vcombine.low %v1664_v43, %v1671_v56  ;;  %v3315_v61 = vcombine.high %v1664_v43, %v1671_v56  ;;  %2608 = vmatprep.mubr.f32.mxu0 %v3773_v11  ;;  %2679 = vmatprep.mubr.f32.mxu1 %v3773_v11  ;;  %v1680_v62 = vrot.slane %v1672_v37, %v4173_v31  ;;  %v1438_v52 = vld [vmem:[%s4033_s14 + $0x70] sm:$0xff] }
 0x288   : > { %v1856_v63 = vrot.slane %v3309_v57, %v4167_v22  ;;  %v1872_v0 = vrot.slane %v3311_v58, %v4167_v22  ;;  %v1687_v1 = vrot.slane %v1673_v59, %v4173_v31  ;;  %v1688_v2 = vcombine.low %v1623_v40, %v1639_v55 }
 0x289   : > { %v1888_v3 = vrot.slane %v3313_v60, %v4167_v22  ;;  %v1904_v4 = vrot.slane %v3315_v61, %v4167_v22  ;;  %v1689_v5 = vcombine.high %v1623_v40, %v1639_v55  ;;  %v2000_v54 = vcombine.low %v1426_v45, %v1430_v48 }
 0x28a   : > { %v1912_v6 = vcombine.low %v1856_v63, %v1872_v0  ;;  %v1913_v7 = vcombine.high %v1856_v63, %v1872_v0  ;;  %v1696_v8 = vrot.slane %v1688_v2, %v4173_v31  ;;  %v3310_v47 = vcombine.low %v1680_v62, %v1687_v1 }
 0x28b   : > { %v1944_v9 = vcombine.low %v1888_v3, %v1904_v4  ;;  %v1945_v10 = vcombine.high %v1888_v3, %v1904_v4  ;;  %v1703_v12 = vrot.slane %v1689_v5, %v4173_v31  ;;  %v3312_v13 = vcombine.high %v1680_v62, %v1687_v1  ;;  %v4277_v62 = vld [vmem:[%s4033_s14 + $0x8] sm:$0xff]  ;;  %v1427_v3 = vld [vmem:[%s4033_s14 + $0x18] sm:$0xff] }
 0x28c   : > { %v1920_v14 = vrot.slane %v1912_v6, %v4173_v31  ;;  %v1927_v15 = vrot.slane %v1913_v7, %v4173_v31  ;;  %v1863_v16 = vrot.slane %v3310_v47, %v4167_v22  ;;  %v2016_v55 = vcombine.low %v1432_v49, %v1436_v51  ;;  %v1429_v4 = vld [vmem:[%s4033_s14 + $0x28] sm:$0xff]  ;;  %v1431_v5 = vld [vmem:[%s4033_s14 + $0x38] sm:$0xff] }
 0x28d   : > { %v1952_v17 = vrot.slane %v1944_v9, %v4173_v31  ;;  %v1959_v18 = vrot.slane %v1945_v10, %v4173_v31  ;;  %v1879_v19 = vrot.slane %v3312_v13, %v4167_v22  ;;  %v3314_v20 = vcombine.low %v1696_v8, %v1703_v12  ;;  %v1433_v9 = vld [vmem:[%s4033_s14 + $0x48] sm:$0xff]  ;;  %v1435_v10 = vld [vmem:[%s4033_s14 + $0x58] sm:$0xff] }
 0x28e   : > { %v3316_v21 = vcombine.high %v1696_v8, %v1703_v12  ;;  %v2032_v43 = vcombine.low %v1434_v50, %v1438_v52  ;;  %v2024_v37 = vrot.slane %v2016_v55, %v4167_v22  ;;  %v2001_v59 = vcombine.high %v1426_v45, %v1430_v48  ;;  %v1437_v12 = vld [vmem:[%s4033_s14 + $0x68] sm:$0xff]  ;;  %v1439_v13 = vld [vmem:[%s4033_s14 + $0x78] sm:$0xff] }
 0x28f   : > { %v1977_v23 = vcombine.high %v1920_v14, %v1952_v17  ;;  %v1979_v24 = vcombine.high %v1927_v15, %v1959_v18  ;;  %v1976_v25 = vcombine.low %v1920_v14, %v1952_v17  ;;  %v1978_v26 = vcombine.low %v1927_v15, %v1959_v18 }
 0x290   : > { %v1895_v27 = vrot.slane %v3314_v20, %v4167_v22  ;;  %v1911_v28 = vrot.slane %v3316_v21, %v4167_v22  ;;  %v1928_v29 = vcombine.low %v1863_v16, %v1879_v19  ;;  %v1929_v32 = vcombine.high %v1863_v16, %v1879_v19 }
 0x291   : > { %2574 = vmatprep.subr.mxu0 %v1977_v23  ;;  %2645 = vmatprep.subr.mxu1 %v1979_v24  ;;  %v2040_v57 = vrot.slane %v2032_v43, %v4167_v22  ;;  %v2017_v60 = vcombine.high %v1432_v49, %v1436_v51  ;;  %v2033_v61 = vcombine.high %v1434_v50, %v1438_v52 }
 0x292   : > { %2575 = vmatpush1.msra.mxu0 %v1976_v25  ;;  %2646 = vmatpush1.msra.mxu1 %v1978_v26  ;;  %v1936_v33 = vrot.slane %v1928_v29, %v4173_v31  ;;  %v1960_v34 = vcombine.low %v1895_v27, %v1911_v28  ;;  %v1943_v35 = vrot.slane %v1929_v32, %v4173_v31 }
 0x293   : > { %3321 = vmatmul.mubr.msk.f32.vlgmr.msra.gmra.mxu0 %vm2256_vm1, %v4205_v30  ;;  %3322 = vmatmul.mubr.msk.f32.vlgmr.msra.gmra.mxu1 %vm2256_vm1, %v4205_v30  ;;  %v1961_v36 = vcombine.high %v1895_v27, %v1911_v28  ;;  %v2080_v0 = vcombine.low %v2024_v37, %v2040_v57  ;;  %v2081_v2 = vcombine.high %v2024_v37, %v2040_v57 }
 0x294   : > { %v1968_v38 = vrot.slane %v1960_v34, %v4173_v31  ;;  %2750 = vmatprep.mubr.f32.mxu0 %v3773_v11  ;;  %2821 = vmatprep.mubr.f32.mxu1 %v3773_v11  ;;  %v1424_v11 = vld [vmem:[%s4033_s14] sm:$0xff]  ;;  %v2015_v7 = vrot.slane %v2001_v59, %v4167_v22  ;;  %v2031_v8 = vrot.slane %v2017_v60, %v4167_v22  ;;  %s3133_s14 = sshll.u32 %s4046_s5, 4  ;;  %s4380_s14 = int_to_ptr.vmem [resolvable:$true] %s3133_s14 }
 0x295   : > { %v1975_v39 = vrot.slane %v1961_v36, %v4173_v31  ;;  %v1984_v53 = vcombine.low %v1424_v11, %v1428_v46  ;;  %v1985_v58 = vcombine.high %v1424_v11, %v1428_v46  ;;  %v2047_v47 = vrot.slane %v2033_v61, %v4167_v22  ;;  %s3634_s1 = scalar_lea.vmem %s4380_s14, 2048  ;;  %p3641_p12 = scmp.lt.s32.totalorder %s4380_s14, %s3639_s9 }
 0x296   : > { %v1981_v40 = vcombine.high %v1936_v33, %v1968_v38  ;;  %v1980_v41 = vcombine.low %v1936_v33, %v1968_v38  ;;  %v2120_v14 = vcombine.low %v4277_v62, %v1429_v4  ;;  %v2136_v15 = vcombine.low %v1427_v3, %v1431_v5  ;;  %p3635_p7 = scmp.ne.s32.totalorder %s4380_s14, %s3634_s1  ;;  %p3642_p1 = scmp.lt.s32.totalorder %s3640_s24, %s3634_s1 }
 0x297   : > { %v1983_v42 = vcombine.high %v1943_v35, %v1975_v39  ;;  %v1982_v44 = vcombine.low %v1943_v35, %v1975_v39  ;;  %v1992_v56 = vrot.slane %v1984_v53, %v4167_v22  ;;  %v1999_v6 = vrot.slane %v1985_v58, %v4167_v22 }
 0x298   : > { %2716 = vmatprep.subr.mxu0 %v1981_v40  ;;  %v2088_v17 = vrot.slane %v2080_v0, %v4173_v31  ;;  %v2095_v19 = vrot.slane %v2081_v2, %v4173_v31  ;;  %v2096_v21 = vcombine.low %v2031_v8, %v2047_v47  ;;  %v2097_v24 = vcombine.high %v2031_v8, %v2047_v47  ;;  %p3636_p8 = pnand %p3635_p7, %p4518_p4  ;;  %p3643_p0 = por %p3642_p1, %p3641_p12 }
 0x299   : > { %2787 = vmatprep.subr.mxu1 %v1983_v42  ;;  %2717 = vmatpush1.msra.mxu0 %v1980_v41  ;;  %v2064_v20 = vcombine.low %v1999_v6, %v2015_v7  ;;  %v2065_v23 = vcombine.high %v1999_v6, %v2015_v7  ;;  %v2152_v25 = vcombine.low %v1433_v9, %v1437_v12 }
 0x29a   : > { %2788 = vmatpush1.msra.mxu1 %v1982_v44  ;;  %3323 = vmatmul.mubr.msk.f32.vlgmr.msra.gmra.mxu0 %vm2256_vm1, %v4205_v30  ;;  %v2168_v26 = vcombine.low %v1435_v10, %v1439_v13  ;;  %v2128_v27 = vrot.slane %v2120_v14, %v4167_v22  ;;  %v2144_v28 = vrot.slane %v2136_v15, %v4167_v22  ;;  %p3637_p10 = pneg %p3636_p8 }
 0x29b   : > { %3324 = vmatmul.mubr.msk.f32.vlgmr.msra.gmra.mxu1 %vm2256_vm1, %v4205_v30  ;;  %v2008_v30 = vrot.slane %v2000_v54, %v4167_v22  ;;  %v2072_v33 = vrot.slane %v2064_v20, %v4173_v31  ;;  %v2104_v34 = vrot.slane %v2096_v21, %v4173_v31  ;;  %v2079_v35 = vrot.slane %v2065_v23, %v4173_v31 }
 0x29c   : > { %v2111_v36 = vrot.slane %v2097_v24, %v4173_v31  ;;  %v2160_v38 = vrot.slane %v2152_v25, %v4167_v22  ;;  %v2176_v39 = vrot.slane %v2168_v26, %v4167_v22  ;;  %v2184_v42 = vcombine.low %v2128_v27, %v2144_v28  ;;  %p3644_p5 = pnand %p3643_p0, %p3637_p10 }
 0x29d   : > { %v2048_v63 = vcombine.low %v1992_v56, %v2008_v30  ;;  %v2049_v1 = vcombine.high %v1992_v56, %v2008_v30  ;;  %v2185_v45 = vcombine.high %v2128_v27, %v2144_v28  ;;  %v2121_v46 = vcombine.high %v4277_v62, %v1429_v4 }
 0x29e   : > { %v2137_v48 = vcombine.high %v1427_v3, %v1431_v5  ;;  %v2153_v49 = vcombine.high %v1433_v9, %v1437_v12  ;;  %v2116_v52 = vcombine.low %v2072_v33, %v2104_v34  ;;  %v2169_v53 = vcombine.high %v1435_v10, %v1439_v13 }
 0x29f   : > { %v2056_v16 = vrot.slane %v2048_v63, %v4173_v31  ;;  %v2063_v18 = vrot.slane %v2049_v1, %v4173_v31  ;;  %v2118_v43 = vcombine.low %v2079_v35, %v2111_v36  ;;  %v2117_v56 = vcombine.high %v2072_v33, %v2104_v34 }
 0x2a0   : > { %v2216_v30 = vcombine.low %v2160_v38, %v2176_v39  ;;  %v2217_v37 = vcombine.high %v2160_v38, %v2176_v39  ;;  %v2119_v59 = vcombine.high %v2079_v35, %v2111_v36  ;;  %v4305_v60 = vrot.slane %v2184_v42, %v4173_v31 }
 0x2a1   : > { %v2112_v29 = vcombine.low %v2056_v16, %v2088_v17  ;;  %v2114_v32 = vcombine.low %v2063_v18, %v2095_v19  ;;  %v2113_v40 = vcombine.high %v2056_v16, %v2088_v17  ;;  %v2115_v41 = vcombine.high %v2063_v18, %v2095_v19 }
 0x2a2   : > { %v4308_v63 = vrot.slane %v2185_v45, %v4173_v31  ;;  %v2135_v0 = vrot.slane %v2121_v46, %v4167_v22  ;;  %v2151_v1 = vrot.slane %v2137_v48, %v4167_v22  ;;  %v2167_v2 = vrot.slane %v2153_v49, %v4167_v22 }
 0x2a3   : > { %v2183_v6 = vrot.slane %v2169_v53, %v4167_v22  ;;  %v4315_v10 = vrot.slane %v2216_v30, %v4173_v31  ;;  %v4318_v12 = vrot.slane %v2217_v37, %v4173_v31 }
 0x2a4   : > { %v2200_v19 = vcombine.low %v2135_v0, %v2151_v1  ;;  %v2201_v24 = vcombine.high %v2135_v0, %v2151_v1 }
 0x2a5   : > { %v2232_v23 = vcombine.low %v2167_v2, %v2183_v6  ;;  %v2248_v27 = vcombine.low %v4305_v60, %v4315_v10  ;;  %v2233_v28 = vcombine.high %v2167_v2, %v2183_v6  ;;  %v2250_v34 = vcombine.low %v4308_v63, %v4318_v12 }
 0x2a6   : > { %v2249_v42 = vcombine.high %v4305_v60, %v4315_v10 }
 0x342   : > { %v2326_v44 = vpop.f32.mrf.mxu0  ;;  %v2397_v11 = vpop.f32.mrf.mxu1 }
 0x343   : > { %v2327_v50 = vadd.f32 %v2326_v44, %v2112_v29  ;;  %v2398_v51 = vadd.f32 %v2397_v11, %v2114_v32  ;;  %v2251_v44 = vcombine.high %v4308_v63, %v4318_v12 }
 0x344   : > { %v2328_v54 = vpop.f32.mrf.mxu0  ;;  %v2399_v55 = vpop.f32.mrf.mxu1 }
 0x345   : > { %v2329_v57 = vadd.f32 %v2328_v54, %v2113_v40  ;;  %v2400_v58 = vadd.f32 %v2399_v55, %v2115_v41  ;;  %v2828_v3 = vcombine.low %v2327_v50, %v2398_v51  ;;  %v2829_v13 = vcombine.high %v2327_v50, %v2398_v51 }
 0x346   : > { %v2468_v61 = vpop.f32.mrf.mxu0  ;;  %v2539_v62 = vpop.f32.mrf.mxu1  ;;  %v2208_v51 = vrot.slane %v2200_v19, %v4173_v31 }
 0x347   : > { %v2844_v4 = vcombine.low %v2329_v57, %v2400_v58  ;;  %v2845_v5 = vcombine.high %v2329_v57, %v2400_v58  ;;  %v2469_v7 = vadd.f32 %v2468_v61, %v2116_v52  ;;  %v2540_v8 = vadd.f32 %v2539_v62, %v2118_v43 }
 0x348   : > { %v2470_v47 = vpop.f32.mrf.mxu0  ;;  %v2541_v9 = vpop.f32.mrf.mxu1  ;;  %v2836_v20 = vrot.slane %v2828_v3, %v4167_v22  ;;  %v2843_v29 = vrot.slane %v2829_v13, %v4167_v22  ;;  %v2240_v52 = vrot.slane %v2232_v23, %v4173_v31  ;;  %v2215_v58 = vrot.slane %v2201_v24, %v4173_v31 }
 0x349   : > { %v2852_v14 = vrot.slane %v2844_v4, %v4167_v22  ;;  %v2471_v15 = vadd.f32 %v2470_v47, %v2117_v56  ;;  %v2542_v16 = vadd.f32 %v2541_v9, %v2119_v59  ;;  %v2860_v17 = vcombine.low %v2469_v7, %v2540_v8 }
 0x34a   : > { %v2861_v18 = vcombine.high %v2469_v7, %v2540_v8  ;;  %v2859_v21 = vrot.slane %v2845_v5, %v4167_v22  ;;  %v2247_v59 = vrot.slane %v2233_v28, %v4173_v31  ;;  %v2252_v8 = vcombine.low %v2208_v51, %v2240_v52 }
 0x34b   : > { %v2876_v25 = vcombine.low %v2471_v15, %v2542_v16  ;;  %v2877_v26 = vcombine.high %v2471_v15, %v2542_v16  ;;  %v2892_v32 = vcombine.low %v2836_v20, %v2852_v14  ;;  %v2893_v33 = vcombine.high %v2836_v20, %v2852_v14 }
 0x34c   : > { %v2868_v35 = vrot.slane %v2860_v17, %v4167_v22  ;;  %v2875_v36 = vrot.slane %v2861_v18, %v4167_v22  ;;  %v2908_v40 = vcombine.low %v2843_v29, %v2859_v21  ;;  %v2909_v41 = vcombine.high %v2843_v29, %v2859_v21 }
 0x34d   : > { %v2884_v38 = vrot.slane %v2876_v25, %v4167_v22  ;;  %v2891_v39 = vrot.slane %v2877_v26, %v4167_v22  ;;  %v2900_v49 = vrot.slane %v2892_v32, %v4173_v31  ;;  %v2907_v50 = vrot.slane %v2893_v33, %v4173_v31 }
 0x34e   : > { %v2916_v56 = vrot.slane %v2908_v40, %v4173_v31  ;;  %v2923_v30 = vrot.slane %v2909_v41, %v4173_v31  ;;  %v2254_v10 = vcombine.low %v2215_v58, %v2247_v59  ;;  %v2253_v12 = vcombine.high %v2208_v51, %v2240_v52 }
 0x34f   : > { %v2924_v11 = vcombine.low %v2868_v35, %v2884_v38  ;;  %v2925_v45 = vcombine.high %v2868_v35, %v2884_v38  ;;  %v2940_v46 = vcombine.low %v2875_v36, %v2891_v39  ;;  %v2941_v48 = vcombine.high %v2875_v36, %v2891_v39 }
 0x350   : > { %v2255_v17 = vcombine.high %v2215_v58, %v2247_v59 }
 0x351   : > { %v2932_v53 = vrot.slane %v2924_v11, %v4173_v31  ;;  %v2939_v54 = vrot.slane %v2925_v45, %v4173_v31  ;;  %v2948_v55 = vrot.slane %v2940_v46, %v4173_v31  ;;  %v2955_v43 = vrot.slane %v2941_v48, %v4173_v31 }
 0x353   : > { %v2610_v37 = vpop.f32.mrf.mxu0  ;;  %v2681_v57 = vpop.f32.mrf.mxu1  ;;  %v2956_v60 = vcombine.low %v2900_v49, %v2932_v53  ;;  %v2957_v61 = vcombine.high %v2900_v49, %v2932_v53  ;;  %v2958_v62 = vcombine.low %v2907_v50, %v2939_v54  ;;  %v2959_v63 = vcombine.high %v2907_v50, %v2939_v54 }
 0x354   : > { %v2960_v0 = vcombine.low %v2916_v56, %v2948_v55  ;;  %v2961_v1 = vcombine.high %v2916_v56, %v2948_v55  ;;  %v2962_v2 = vcombine.low %v2923_v30, %v2955_v43  ;;  %v2963_v3 = vcombine.high %v2923_v30, %v2955_v43 }
 0x355   : > { %v2612_v4 = vpop.f32.mrf.mxu0  ;;  %v2683_v5 = vpop.f32.mrf.mxu1  ;;  %3100 = vst [vmem:[%s4046_s5] sm:$0xff] %v2956_v60  ;;  %3102 = vst [vmem:[%s4046_s5 + $0x10] sm:$0xff] %v2957_v61  ;;  %v2611_v47 = vadd.f32 %v2610_v37, %v2248_v27  ;;  %v2682_v9 = vadd.f32 %v2681_v57, %v2250_v34 }
 0x356   : > { %3104 = vst [vmem:[%s4046_s5 + $0x20] sm:$0xff] %v2958_v62  ;;  %3106 = vst [vmem:[%s4046_s5 + $0x30] sm:$0xff] %v2959_v63  ;;  %v2613_v6 = vadd.f32 %v2612_v4, %v2249_v42  ;;  %v2684_v7 = vadd.f32 %v2683_v5, %v2251_v44 }
 0x357   : > { %3108 = vst [vmem:[%s4046_s5 + $0x40] sm:$0xff] %v2960_v0  ;;  %3110 = vst [vmem:[%s4046_s5 + $0x50] sm:$0xff] %v2961_v1  ;;  %v2964_v18 = vcombine.low %v2611_v47, %v2682_v9  ;;  %v2965_v25 = vcombine.high %v2611_v47, %v2682_v9 }
 0x358   : > { %3112 = vst [vmem:[%s4046_s5 + $0x60] sm:$0xff] %v2962_v2  ;;  %3114 = vst [vmem:[%s4046_s5 + $0x70] sm:$0xff] %v2963_v3  ;;  %v2980_v13 = vcombine.low %v2613_v6, %v2684_v7  ;;  %v2981_v19 = vcombine.high %v2613_v6, %v2684_v7 }
 0x359   : > { %v2972_v32 = vrot.slane %v2964_v18, %v4167_v22  ;;  %v2979_v36 = vrot.slane %v2965_v25, %v4167_v22 }
 0x35a   : > { %v2752_v14 = vpop.f32.mrf.mxu0  ;;  %v2988_v26 = vrot.slane %v2980_v13, %v4167_v22  ;;  %v2995_v33 = vrot.slane %v2981_v19, %v4167_v22 }
 0x35b   : > { %v2753_v15 = vadd.f32 %v2752_v14, %v2252_v8  ;;  %v2823_v16 = vpop.f32.mrf.mxu1 }
 0x35c   : > { %v2754_v20 = vpop.f32.mrf.mxu0  ;;  %v2824_v21 = vadd.f32 %v2823_v16, %v2254_v10  ;;  %v3028_v38 = vcombine.low %v2972_v32, %v2988_v26  ;;  %v3029_v39 = vcombine.high %v2972_v32, %v2988_v26  ;;  %v3044_v11 = vcombine.low %v2979_v36, %v2995_v33 }
 0x35d   : > { %v2755_v23 = vadd.f32 %v2754_v20, %v2253_v12  ;;  %v2825_v24 = vpop.f32.mrf.mxu1  ;;  %v3045_v45 = vcombine.high %v2979_v36, %v2995_v33 }
 0x35e   : > { %v2996_v27 = vcombine.low %v2753_v15, %v2824_v21  ;;  %v2997_v28 = vcombine.high %v2753_v15, %v2824_v21  ;;  %v2826_v29 = vadd.f32 %v2825_v24, %v2255_v17  ;;  %v3036_v51 = vrot.slane %v3028_v38, %v4173_v31 }
 0x35f   : > { %v3043_v52 = vrot.slane %v3029_v39, %v4173_v31  ;;  %v3052_v43 = vrot.slane %v3044_v11, %v4173_v31  ;;  %v3059_v56 = vrot.slane %v3045_v45, %v4173_v31 }
 0x360   : > { %v3012_v34 = vcombine.low %v2755_v23, %v2826_v29  ;;  %v3013_v35 = vcombine.high %v2755_v23, %v2826_v29  ;;  %v3004_v40 = vrot.slane %v2996_v27, %v4167_v22  ;;  %v3011_v41 = vrot.slane %v2997_v28, %v4167_v22 }
 0x362   : > { %v3020_v42 = vrot.slane %v3012_v34, %v4167_v22  ;;  %v3027_v44 = vrot.slane %v3013_v35, %v4167_v22 }
 0x364   : > { %v3060_v46 = vcombine.low %v3004_v40, %v3020_v42  ;;  %v3061_v48 = vcombine.high %v3004_v40, %v3020_v42  ;;  %v3076_v49 = vcombine.low %v3011_v41, %v3027_v44  ;;  %v3077_v50 = vcombine.high %v3011_v41, %v3027_v44 }
 0x366   : > { %v3068_v53 = vrot.slane %v3060_v46, %v4173_v31  ;;  %v3075_v54 = vrot.slane %v3061_v48, %v4173_v31  ;;  %v3084_v22 = vrot.slane %v3076_v49, %v4173_v31  ;;  %v3091_v55 = vrot.slane %v3077_v50, %v4173_v31 }
 0x368   : > { %v3092_v30 = vcombine.low %v3036_v51, %v3068_v53  ;;  %v3093_v37 = vcombine.high %v3036_v51, %v3068_v53  ;;  %v3094_v57 = vcombine.low %v3043_v52, %v3075_v54  ;;  %v3095_v58 = vcombine.high %v3043_v52, %v3075_v54 }
 0x369   : > { %v3096_v59 = vcombine.low %v3052_v43, %v3084_v22  ;;  %v3097_v31 = vcombine.high %v3052_v43, %v3084_v22  ;;  %v3098_v60 = vcombine.low %v3059_v56, %v3091_v55  ;;  %v3099_v61 = vcombine.high %v3059_v56, %v3091_v55 }
 0x36a   : > { %3101 = vst [vmem:[%s4046_s5 + $0x8] sm:$0xff] %v3092_v30  ;;  %3103 = vst [vmem:[%s4046_s5 + $0x18] sm:$0xff] %v3093_v37 }
 0x36b   : > { %3105 = vst [vmem:[%s4046_s5 + $0x28] sm:$0xff] %v3094_v57  ;;  %3107 = vst [vmem:[%s4046_s5 + $0x38] sm:$0xff] %v3095_v58 }
 0x36c   : > { %3109 = vst [vmem:[%s4046_s5 + $0x48] sm:$0xff] %v3096_v59  ;;  %3111 = vst [vmem:[%s4046_s5 + $0x58] sm:$0xff] %v3097_v31 }
 0x36d   : > { %3113 = vst [vmem:[%s4046_s5 + $0x68] sm:$0xff] %v3098_v60  ;;  %3115 = vst [vmem:[%s4046_s5 + $0x78] sm:$0xff] %v3099_v61 }
 0x36e   : > { %3647 = shalt.err (!%p3644_p5)
}
 0x36f   : > { %s3648_s16 = scalar_lea.hbm %s4378_s11, 2048  ;;  %s3652_s21 = scalar_lea.hbm %s4516_s13, 8192 }
 0x370   : > { %p3649_p13 = scmp.ne.s32.totalorder %s4378_s11, %s3648_s16  ;;  %p3653_p9 = scmp.lt.s32.totalorder %s4378_s11, %s4516_s13 }
 0x371   : > { %p3654_p6 = scmp.lt.s32.totalorder %s3652_s21, %s3648_s16 }
 0x372   : > { %p3650_p2 = pnand %p3649_p13, %p4518_p4 }
 0x373   : > { %p3655_p11 = por %p3654_p6, %p3653_p9 }
 0x374   : > { %p3651_p3 = pneg %p3650_p2 }
 0x376   : > { %p3656_p7 = pnand %p3655_p11, %p3651_p3 }
 0x378   : > { %3659 = shalt.err (!%p3656_p7)
}
 0x379   : > { %s3776_s10 = smov 128   ;;  %s3777_s2 = smov 8  }
 0x37a   : > { %3411 = dma.vmem_to_hbm [thread:$0]  (%p4518_p4), %s4380_s14, 2048, %s4378_s11, %s4392_s30, %s3776_s10, %s3776_s10, %s3777_s2  }
 0x37b PF: > { %s4519_s12 = sld [smem:[#allocation14_spill]]  ;;  %p3431_p8 = scmp.ge.s32.totalorder %s3762_s28, 2 }
 0x37c   : > { %s4520_s15 = sld [smem:[#allocation19_spill]] }
 0x381   : > { %s3148_s7 = sand.u32 1, %s4519_s12  }
 0x382   : > { %p4521_p10 = scmp.ne.s32.totalorder %s4520_s15, 0  ;;  %s3149_s1 = scalar_lea.sflag [#allocation5], %s3148_s7 }
 0x384   : > { %p3425_p12 = pnand %p3431_p8, %p4521_p10 }
 0x386   : > { %p3426_p1 = pneg %p3425_p12 }
 0x388   : > { %3717 = dma.done.wait (%p3426_p1), %s3149_s1, 2048  }
 0x389   : > { %3719 = vsyncadd (%p3426_p1), %s3149_s1, 4294965248  ;;  %s22_s28 = sadd.s32 1, %s3762_s28   ;;  %s4522_s14 = smov %s3990_s18 }
 0x38a   : > { %p19_p0 = scmp.ge.s32.totalorder %s22_s28, 6   ;;  %s4523_s24 = sld [smem:[#allocation17_spill]] }
 0x38b   : > { %s4524_s26 = sld [smem:[#allocation20_spill]]  ;;  %s4525_s18 = smov %s3726_s19 }
 0x38c   : > { %s4526_s19 = smov %s3730_s20  ;;  %s4527_s20 = smov %s3995_s25 }
 0x38d   : > { %s4528_s21 = smov %s3738_s22  ;;  %s4529_s22 = smov %s3742_s23 }
 0x38e   : > { %s4530_s23 = smov %s4522_s14  ;;  %s4531_s25 = smov %s3758_s27 }
 0x38f   : > { %s4532_s27 = smov %s4538_s0  ;;  %21 = sbr.rel (!%p19_p0) target bundleno = 16 (0x10), region = 107 }
 0x394   :  { %3154 = vsyncpa [#allocation4], 1 }
 0x395   :  { %3156 = vsyncpa [#allocation4 + $0x1], 1 }
 0x396   :  { %3157 = vsyncpa [#allocation7], 1 }
 0x397   :  { %3158 = vsyncpa [#allocation5], 1 }
 0x398   :  { %3160 = vsyncpa [#allocation5 + $0x1], 1 }

</bundles_post_ra>
